<compile_context>
chip_gen: v7x
topology: tpu7x:2x2x1
jax: 0.10.0
libtpu: 0.0.40
codegen_flags: <defaults>
</compile_context>

<pallas_src>
import functools
import math

import jax
import jax.numpy as jnp
from jax.experimental import pallas as pl
from jax.experimental.pallas import tpu as pltpu  # noqa: F401  (kept for TPU-specific tuning hooks)

LN_EPS = 1e-5


def _layer_norm(x, gamma, beta):
    mu = jnp.mean(x, axis=-1, keepdims=True)
    var = jnp.mean((x - mu) ** 2, axis=-1, keepdims=True)
    return (x - mu) * jax.lax.rsqrt(var + LN_EPS) * gamma + beta


def decoder_layer_kernel(
    tgt_ref,     # (B, St, D)
    mem_ref,     # (B, Sm, D)
    wq_ref,      # (D, Do)
    wkv_ref,     # (D, 2*Do)   [Wk | Wv]
    wo_ref,      # (Do, D)
    w1_ref,      # (D, F)
    w2_ref,      # (F, D)
    vec_ref,     # (9, W) packed: bq, bkv, bo, b1, b2, g1, be1, g2, be2 (zero padded)
    out_ref,     # (B, St, D)
    attn_ref,    # (B, H, St, Sm)
    *, nhead: int,
):
    B, St, D = tgt_ref.shape
    _, Sm, _ = mem_ref.shape
    Do = wq_ref.shape[1]
    F = w1_ref.shape[1]
    hd = Do // nhead
    scale = 1.0 / math.sqrt(hd)

    # Packed parameter rows (zero-padded to common lane width W).
    bq = vec_ref[0:1, 0:Do]
    bkv = vec_ref[1:2, 0:2 * Do]
    bo = vec_ref[2:3, 0:D]
    b1 = vec_ref[3:4, 0:F]
    b2 = vec_ref[4:5, 0:D]
    g1 = vec_ref[5:6, 0:D]
    be1 = vec_ref[6:7, 0:D]
    g2 = vec_ref[7:8, 0:D]
    be2 = vec_ref[8:9, 0:D]

    # Fold batch into the matmul row dimension (layout-preserving reshape).
    t = tgt_ref[...].astype(jnp.float32).reshape(B * St, D)
    m = mem_ref[...].astype(jnp.float32).reshape(B * Sm, D)

    # ---- fused projections: one full-width matmul per input tensor ----------
    q_all = jnp.dot(t, wq_ref[...], preferred_element_type=jnp.float32) + bq      # (B*St, Do)
    kv_all = jnp.dot(m, wkv_ref[...], preferred_element_type=jnp.float32) + bkv   # (B*Sm, 2*Do)

    # ---- attention: per-head scores/context, batched over B -----------------
    ctx_parts = []
    for h in range(nhead):                               # static unroll, nhead small
        lo = h * hd
        qh = q_all[:, lo:lo + hd].reshape(B, St, hd)
        kh = kv_all[:, lo:lo + hd].reshape(B, Sm, hd)
        vh = kv_all[:, Do + lo:Do + lo + hd].reshape(B, Sm, hd)

        s = jnp.einsum('bqd,bkd->bqk', qh, kh,
                       preferred_element_type=jnp.float32) * scale                # (B, St, Sm)
        # TODO(synk): attn_mask support omitted (module exercised with attn_mask=None)
        s = s - jnp.max(s, axis=-1, keepdims=True)
        p = jnp.exp(s)
        p = p / jnp.sum(p, axis=-1, keepdims=True)       # exact softmax

        for b in range(B):
            attn_ref[b, h] = p[b]

        ctx_parts.append(
            jnp.einsum('bqk,bkd->bqd', p, vh,
                       preferred_element_type=jnp.float32).reshape(B * St, hd))

    # ---- fused output projection ---------------------------------------------
    ctx = jnp.concatenate(ctx_parts, axis=-1)                                      # (B*St, Do)
    tgt2 = jnp.dot(ctx, wo_ref[...], preferred_element_type=jnp.float32) + bo

    # ---- residual + layernorm 1 (dropout1 == identity in eval) ---------------
    x = _layer_norm(t + tgt2, g1, be1)

    # ---- feed forward ----------------------------------------------------------
    hidden = jnp.dot(x, w1_ref[...], preferred_element_type=jnp.float32) + b1
    hidden = jnp.maximum(hidden, 0.0)                     # relu (inner dropout == identity)
    y2 = jnp.dot(hidden, w2_ref[...], preferred_element_type=jnp.float32) + b2

    # ---- residual + layernorm 2 -------------------------------------------------
    y = _layer_norm(x + y2, g2, be2)

    out_ref[...] = y.reshape(B, St, D).astype(out_ref.dtype)


def decoder_layer(tgt, memory, params, nhead):
    """DecoderLayer forward. tgt: (B, St, D); memory: (B, Sm, D).

    Returns (y, attn) with y: (B, St, D), attn: (B, nhead, St, Sm).
    """
    B, St, D = tgt.shape
    Bm, Sm, Dm = memory.shape
    assert B == Bm and D == Dm
    Do = params["wq"].shape[1]
    F = params["w1"].shape[1]
    assert Do % nhead == 0

    # ---- one-time parameter re-packing (would be amortized in a real model) ----
    wkv = jnp.concatenate([params["wk"], params["wv"]], axis=1)          # (D, 2*Do)
    bkv = jnp.concatenate([params["bk"], params["bv"]], axis=0)          # (2*Do,)

    vec_rows = [params["bq"], bkv, params["bo"], params["b1"], params["b2"],
                params["g1"], params["be1"], params["g2"], params["be2"]]
    W = max(int(v.shape[0]) for v in vec_rows)
    vecs = jnp.stack(
        [jnp.pad(v.astype(jnp.float32), (0, W - int(v.shape[0]))) for v in vec_rows],
        axis=0)                                                           # (9, W)

    operands = (tgt, memory, params["wq"], wkv, params["wo"],
                params["w1"], params["w2"], vecs)

    def full_spec(shape):
        nd = len(shape)

        def index_map():          # grid == () -> zero-arg index map
            return (0,) * nd

        return pl.BlockSpec(shape, index_map)

    in_specs = [full_spec(op.shape) for op in operands]
    out_specs = (full_spec((B, St, D)), full_spec((B, nhead, St, Sm)))
    out_shape = (
        jax.ShapeDtypeStruct((B, St, D), tgt.dtype),
        jax.ShapeDtypeStruct((B, nhead, St, Sm), jnp.float32),
    )

    kernel = functools.partial(decoder_layer_kernel, nhead=nhead)
    y, attn = pl.pallas_call(
        kernel,
        out_shape=out_shape,
        in_specs=in_specs,
        out_specs=out_specs,
    )(*operands)
    return y, attn


def decoder_layer_ref(tgt, memory, p, nhead):
    """Pure-JAX reference mirroring the PyTorch DecoderLayer in eval mode."""
    B, St, D = tgt.shape
    Do = p["wq"].shape[1]
    hd = Do // nhead

    def split(x):
        b, s, _ = x.shape
        return x.reshape(b, s, nhead, hd).transpose(0, 2, 1, 3)   # (B, H, S, hd)

    q = split(tgt @ p["wq"] + p["bq"])
    k = split(memory @ p["wk"] + p["bk"])
    v = split(memory @ p["wv"] + p["bv"])
    s = jnp.einsum("bhqe,bhke->bhqk", q, k) / math.sqrt(hd)
    w = jax.nn.softmax(s, axis=-1)
    o = jnp.einsum("bhqk,bhke->bhqe", w, v)
    o = o.transpose(0, 2, 1, 3).reshape(B, St, Do)
    tgt2 = o @ p["wo"] + p["bo"]

    def ln(x, g, b):
        mu = x.mean(-1, keepdims=True)
        var = ((x - mu) ** 2).mean(-1, keepdims=True)
        return (x - mu) * jax.lax.rsqrt(var + LN_EPS) * g + b

    t1 = ln(tgt + tgt2, p["g1"], p["be1"])
    t2 = ln(t1 + jax.nn.relu(t1 @ p["w1"] + p["b1"]) @ p["w2"] + p["b2"],
            p["g2"], p["be2"])
    return t2, w


def make_params(key, in_dim, out_dim, dim_feedforward):
    """Deterministic synthetic parameters (xavier-uniform-like matrices)."""
    def xavier(k, fan_in, fan_out):
        a = math.sqrt(6.0 / (fan_in + fan_out))
        return jax.random.uniform(k, (fan_in, fan_out), jnp.float32, -a, a)

    ks = jax.random.split(key, 12)
    return {
        "wq": xavier(ks[0], in_dim, out_dim),
        "bq": 0.02 * jax.random.normal(ks[6], (out_dim,), jnp.float32),
        "wk": xavier(ks[1], in_dim, out_dim),
        "bk": 0.02 * jax.random.normal(ks[7], (out_dim,), jnp.float32),
        "wv": xavier(ks[2], in_dim, out_dim),
        "bv": 0.02 * jax.random.normal(ks[8], (out_dim,), jnp.float32),
        "wo": xavier(ks[3], out_dim, in_dim),
        "bo": 0.02 * jax.random.normal(ks[9], (in_dim,), jnp.float32),
        "w1": xavier(ks[4], in_dim, dim_feedforward),
        "b1": 0.02 * jax.random.normal(ks[10], (dim_feedforward,), jnp.float32),
        "w2": xavier(ks[5], dim_feedforward, in_dim),
        "b2": 0.02 * jax.random.normal(ks[11], (in_dim,), jnp.float32),
        "g1": jnp.ones((in_dim,), jnp.float32),
        "be1": jnp.zeros((in_dim,), jnp.float32),
        "g2": jnp.ones((in_dim,), jnp.float32),
        "be2": jnp.zeros((in_dim,), jnp.float32),
    }


if __name__ == "__main__":
    # Small shapes consistent with the module (in_model == out_model, nhead | out_model):
    # B=2, S_tgt=8, S_mem=16, in_model=out_model=32, dim_feedforward=64, nhead=4.
    B, ST, SM, D, D_FF, NHEAD = 2, 8, 16, 32, 64, 4

    key = jax.random.PRNGKey(0)
    k_t, k_m, k_p = jax.random.split(key, 3)
    tgt = jax.random.normal(k_t, (B, ST, D), jnp.float32)
    memory = jax.random.normal(k_m, (B, SM, D), jnp.float32)
    params = make_params(k_p, D, D, D_FF)

    fwd = jax.jit(functools.partial(decoder_layer, nhead=NHEAD))
    y, attn = fwd(tgt, memory, params)
    jax.block_until_ready((y, attn))

    assert y.shape == (B, ST, D)
    assert attn.shape == (B, NHEAD, ST, SM)

    # Numerical check against a pure-JAX reference of the PyTorch forward (eval mode).
    y_want, attn_want = decoder_layer_ref(tgt, memory, params, NHEAD)
    assert jnp.allclose(y, y_want, atol=1e-2, rtol=1e-2), \
        float(jnp.max(jnp.abs(y - y_want)))
    assert jnp.allclose(attn, attn_want, atol=1e-2, rtol=1e-2), \
        float(jnp.max(jnp.abs(attn - attn_want)))

    print("KERNEL_OK")
</pallas_src>

<mosaic_0001>
module attributes {stable_mosaic.version = 11 : i64} {
  func.func @decoder_layer_kernel(%arg0: memref<2x8x32xf32, #tpu.memory_space<vmem>>, %arg1: memref<2x16x32xf32, #tpu.memory_space<vmem>>, %arg2: memref<32x32xf32, #tpu.memory_space<vmem>>, %arg3: memref<32x64xf32, #tpu.memory_space<vmem>>, %arg4: memref<32x32xf32, #tpu.memory_space<vmem>>, %arg5: memref<32x64xf32, #tpu.memory_space<vmem>>, %arg6: memref<64x32xf32, #tpu.memory_space<vmem>>, %arg7: memref<9x64xf32, #tpu.memory_space<vmem>>, %arg8: memref<2x8x32xf32, #tpu.memory_space<vmem>>, %arg9: memref<2x4x8x16xf32, #tpu.memory_space<vmem>>) attributes {dimension_semantics = [], scalar_prefetch = 0 : i64, scratch_operands = 0 : i64, tpu.core_type = #tpu.core_type<tc>} {
    %c0 = arith.constant 0 : index
    %c0_0 = arith.constant 0 : index
    %0 = vector.load %arg7[%c0, %c0_0] : memref<9x64xf32, #tpu.memory_space<vmem>>, vector<1x32xf32>
    %c1 = arith.constant 1 : index
    %c0_1 = arith.constant 0 : index
    %1 = vector.load %arg7[%c1, %c0_1] : memref<9x64xf32, #tpu.memory_space<vmem>>, vector<1x64xf32>
    %c2 = arith.constant 2 : index
    %c0_2 = arith.constant 0 : index
    %2 = vector.load %arg7[%c2, %c0_2] : memref<9x64xf32, #tpu.memory_space<vmem>>, vector<1x32xf32>
    %c3 = arith.constant 3 : index
    %c0_3 = arith.constant 0 : index
    %3 = vector.load %arg7[%c3, %c0_3] : memref<9x64xf32, #tpu.memory_space<vmem>>, vector<1x64xf32>
    %c4 = arith.constant 4 : index
    %c0_4 = arith.constant 0 : index
    %4 = vector.load %arg7[%c4, %c0_4] : memref<9x64xf32, #tpu.memory_space<vmem>>, vector<1x32xf32>
    %c5 = arith.constant 5 : index
    %c0_5 = arith.constant 0 : index
    %5 = vector.load %arg7[%c5, %c0_5] : memref<9x64xf32, #tpu.memory_space<vmem>>, vector<1x32xf32>
    %c6 = arith.constant 6 : index
    %c0_6 = arith.constant 0 : index
    %6 = vector.load %arg7[%c6, %c0_6] : memref<9x64xf32, #tpu.memory_space<vmem>>, vector<1x32xf32>
    %c7 = arith.constant 7 : index
    %c0_7 = arith.constant 0 : index
    %7 = vector.load %arg7[%c7, %c0_7] : memref<9x64xf32, #tpu.memory_space<vmem>>, vector<1x32xf32>
    %c8 = arith.constant 8 : index
    %c0_8 = arith.constant 0 : index
    %8 = vector.load %arg7[%c8, %c0_8] : memref<9x64xf32, #tpu.memory_space<vmem>>, vector<1x32xf32>
    %c0_9 = arith.constant 0 : index
    %c0_10 = arith.constant 0 : index
    %c0_11 = arith.constant 0 : index
    %9 = vector.load %arg0[%c0_9, %c0_10, %c0_11] : memref<2x8x32xf32, #tpu.memory_space<vmem>>, vector<2x8x32xf32>
    %10 = vector.shape_cast %9 : vector<2x8x32xf32> to vector<16x32xf32>
    %c0_12 = arith.constant 0 : index
    %c0_13 = arith.constant 0 : index
    %c0_14 = arith.constant 0 : index
    %11 = vector.load %arg1[%c0_12, %c0_13, %c0_14] : memref<2x16x32xf32, #tpu.memory_space<vmem>>, vector<2x16x32xf32>
    %12 = vector.shape_cast %11 : vector<2x16x32xf32> to vector<32x32xf32>
    %c0_15 = arith.constant 0 : index
    %c0_16 = arith.constant 0 : index
    %13 = vector.load %arg2[%c0_15, %c0_16] : memref<32x32xf32, #tpu.memory_space<vmem>>, vector<32x32xf32>
    %cst = arith.constant dense<0.000000e+00> : vector<16x32xf32>
    %14 = tpu.matmul %10, %13, %cst {dimension_numbers = #tpu.dot_dimension_numbers<[1], [0], [0], [1], [0, 0, 1, 1], [], []>} : vector<16x32xf32>, vector<32x32xf32>, vector<16x32xf32> -> vector<16x32xf32>
    %15 = vector.broadcast %0 : vector<1x32xf32> to vector<16x32xf32>
    %16 = arith.addf %14, %15 : vector<16x32xf32>
    %c0_17 = arith.constant 0 : index
    %c0_18 = arith.constant 0 : index
    %17 = vector.load %arg3[%c0_17, %c0_18] : memref<32x64xf32, #tpu.memory_space<vmem>>, vector<32x64xf32>
    %cst_19 = arith.constant dense<0.000000e+00> : vector<32x64xf32>
    %18 = tpu.matmul %12, %17, %cst_19 {dimension_numbers = #tpu.dot_dimension_numbers<[1], [0], [0], [1], [0, 0, 1, 1], [], []>} : vector<32x32xf32>, vector<32x64xf32>, vector<32x64xf32> -> vector<32x64xf32>
    %19 = vector.broadcast %1 : vector<1x64xf32> to vector<32x64xf32>
    %20 = arith.addf %18, %19 : vector<32x64xf32>
    %21 = vector.extract_strided_slice %16 {offsets = [0, 0], sizes = [16, 8], strides = [1, 1]} : vector<16x32xf32> to vector<16x8xf32>
    %22 = vector.shape_cast %21 : vector<16x8xf32> to vector<2x8x8xf32>
    %23 = vector.extract_strided_slice %20 {offsets = [0, 0], sizes = [32, 8], strides = [1, 1]} : vector<32x64xf32> to vector<32x8xf32>
    %24 = vector.shape_cast %23 : vector<32x8xf32> to vector<2x16x8xf32>
    %25 = vector.extract_strided_slice %20 {offsets = [0, 32], sizes = [32, 8], strides = [1, 1]} : vector<32x64xf32> to vector<32x8xf32>
    %26 = vector.shape_cast %25 : vector<32x8xf32> to vector<2x16x8xf32>
    "tpu.trace_start"() <{level = 10 : i32, message = "bqd,bkd->bqk"}> : () -> ()
    %cst_20 = arith.constant dense<0.000000e+00> : vector<2x8x16xf32>
    %27 = tpu.matmul %22, %24, %cst_20 {dimension_numbers = #tpu.dot_dimension_numbers<[2], [2], [1], [1], [0, 0, 0, 1, 1, 1], [0], [0]>} : vector<2x8x8xf32>, vector<2x16x8xf32>, vector<2x8x16xf32> -> vector<2x8x16xf32>
    "tpu.trace_stop"() : () -> ()
    %cst_21 = arith.constant 0.353553385 : f32
    %28 = vector.broadcast %cst_21 : f32 to vector<2x8x16xf32>
    %29 = arith.mulf %27, %28 : vector<2x8x16xf32>
    %cst_22 = arith.constant dense<0xFF800000> : vector<2x8xf32>
    %30 = vector.multi_reduction <maximumf>, %29, %cst_22 [2] : vector<2x8x16xf32> to vector<2x8xf32>
    %31 = vector.shape_cast %30 : vector<2x8xf32> to vector<2x8x1xf32>
    %32 = vector.broadcast %31 : vector<2x8x1xf32> to vector<2x8x16xf32>
    %33 = arith.subf %29, %32 : vector<2x8x16xf32>
    %34 = math.exp %33 : vector<2x8x16xf32>
    %cst_23 = arith.constant dense<0.000000e+00> : vector<2x8xf32>
    %35 = vector.multi_reduction <add>, %34, %cst_23 [2] : vector<2x8x16xf32> to vector<2x8xf32>
    %36 = vector.shape_cast %35 : vector<2x8xf32> to vector<2x8x1xf32>
    %37 = vector.broadcast %36 : vector<2x8x1xf32> to vector<2x8x16xf32>
    %38 = arith.divf %34, %37 : vector<2x8x16xf32>
    %39 = vector.extract_strided_slice %38 {offsets = [0, 0, 0], sizes = [1, 8, 16], strides = [1, 1, 1]} : vector<2x8x16xf32> to vector<1x8x16xf32>
    %40 = vector.shape_cast %39 : vector<1x8x16xf32> to vector<8x16xf32>
    %c0_24 = arith.constant 0 : index
    %c0_25 = arith.constant 0 : index
    %c0_26 = arith.constant 0 : index
    %c0_27 = arith.constant 0 : index
    %41 = vector.load %arg9[%c0_24, %c0_25, %c0_26, %c0_27] : memref<2x4x8x16xf32, #tpu.memory_space<vmem>>, vector<1x1x8x16xf32>
    %42 = vector.shape_cast %41 : vector<1x1x8x16xf32> to vector<8x16xf32>
    %43 = vector.shape_cast %40 : vector<8x16xf32> to vector<1x1x8x16xf32>
    tpu.vector_store %arg9[%c0_24, %c0_25, %c0_26, %c0_27], %43 {strides = array<i32>} : memref<2x4x8x16xf32, #tpu.memory_space<vmem>>, vector<1x1x8x16xf32>,
    %44 = vector.extract_strided_slice %38 {offsets = [1, 0, 0], sizes = [1, 8, 16], strides = [1, 1, 1]} : vector<2x8x16xf32> to vector<1x8x16xf32>
    %45 = vector.shape_cast %44 : vector<1x8x16xf32> to vector<8x16xf32>
    %c1_28 = arith.constant 1 : index
    %c0_29 = arith.constant 0 : index
    %c0_30 = arith.constant 0 : index
    %c0_31 = arith.constant 0 : index
    %46 = vector.load %arg9[%c1_28, %c0_29, %c0_30, %c0_31] : memref<2x4x8x16xf32, #tpu.memory_space<vmem>>, vector<1x1x8x16xf32>
    %47 = vector.shape_cast %46 : vector<1x1x8x16xf32> to vector<8x16xf32>
    %48 = vector.shape_cast %45 : vector<8x16xf32> to vector<1x1x8x16xf32>
    tpu.vector_store %arg9[%c1_28, %c0_29, %c0_30, %c0_31], %48 {strides = array<i32>} : memref<2x4x8x16xf32, #tpu.memory_space<vmem>>, vector<1x1x8x16xf32>,
    "tpu.trace_start"() <{level = 10 : i32, message = "bqk,bkd->bqd"}> : () -> ()
    %cst_32 = arith.constant dense<0.000000e+00> : vector<2x8x8xf32>
    %49 = tpu.matmul %38, %26, %cst_32 {dimension_numbers = #tpu.dot_dimension_numbers<[2], [1], [1], [2], [0, 0, 0, 1, 1, 2], [0], [0]>} : vector<2x8x16xf32>, vector<2x16x8xf32>, vector<2x8x8xf32> -> vector<2x8x8xf32>
    "tpu.trace_stop"() : () -> ()
    %50 = vector.shape_cast %49 : vector<2x8x8xf32> to vector<16x8xf32>
    %51 = vector.extract_strided_slice %16 {offsets = [0, 8], sizes = [16, 8], strides = [1, 1]} : vector<16x32xf32> to vector<16x8xf32>
    %52 = vector.shape_cast %51 : vector<16x8xf32> to vector<2x8x8xf32>
    %53 = vector.extract_strided_slice %20 {offsets = [0, 8], sizes = [32, 8], strides = [1, 1]} : vector<32x64xf32> to vector<32x8xf32>
    %54 = vector.shape_cast %53 : vector<32x8xf32> to vector<2x16x8xf32>
    %55 = vector.extract_strided_slice %20 {offsets = [0, 40], sizes = [32, 8], strides = [1, 1]} : vector<32x64xf32> to vector<32x8xf32>
    %56 = vector.shape_cast %55 : vector<32x8xf32> to vector<2x16x8xf32>
    "tpu.trace_start"() <{level = 10 : i32, message = "bqd,bkd->bqk"}> : () -> ()
    %cst_33 = arith.constant dense<0.000000e+00> : vector<2x8x16xf32>
    %57 = tpu.matmul %52, %54, %cst_33 {dimension_numbers = #tpu.dot_dimension_numbers<[2], [2], [1], [1], [0, 0, 0, 1, 1, 1], [0], [0]>} : vector<2x8x8xf32>, vector<2x16x8xf32>, vector<2x8x16xf32> -> vector<2x8x16xf32>
    "tpu.trace_stop"() : () -> ()
    %cst_34 = arith.constant 0.353553385 : f32
    %58 = vector.broadcast %cst_34 : f32 to vector<2x8x16xf32>
    %59 = arith.mulf %57, %58 : vector<2x8x16xf32>
    %cst_35 = arith.constant dense<0xFF800000> : vector<2x8xf32>
    %60 = vector.multi_reduction <maximumf>, %59, %cst_35 [2] : vector<2x8x16xf32> to vector<2x8xf32>
    %61 = vector.shape_cast %60 : vector<2x8xf32> to vector<2x8x1xf32>
    %62 = vector.broadcast %61 : vector<2x8x1xf32> to vector<2x8x16xf32>
    %63 = arith.subf %59, %62 : vector<2x8x16xf32>
    %64 = math.exp %63 : vector<2x8x16xf32>
    %cst_36 = arith.constant dense<0.000000e+00> : vector<2x8xf32>
    %65 = vector.multi_reduction <add>, %64, %cst_36 [2] : vector<2x8x16xf32> to vector<2x8xf32>
    %66 = vector.shape_cast %65 : vector<2x8xf32> to vector<2x8x1xf32>
    %67 = vector.broadcast %66 : vector<2x8x1xf32> to vector<2x8x16xf32>
    %68 = arith.divf %64, %67 : vector<2x8x16xf32>
    %69 = vector.extract_strided_slice %68 {offsets = [0, 0, 0], sizes = [1, 8, 16], strides = [1, 1, 1]} : vector<2x8x16xf32> to vector<1x8x16xf32>
    %70 = vector.shape_cast %69 : vector<1x8x16xf32> to vector<8x16xf32>
    %c0_37 = arith.constant 0 : index
    %c1_38 = arith.constant 1 : index
    %c0_39 = arith.constant 0 : index
    %c0_40 = arith.constant 0 : index
    %71 = vector.load %arg9[%c0_37, %c1_38, %c0_39, %c0_40] : memref<2x4x8x16xf32, #tpu.memory_space<vmem>>, vector<1x1x8x16xf32>
    %72 = vector.shape_cast %71 : vector<1x1x8x16xf32> to vector<8x16xf32>
    %73 = vector.shape_cast %70 : vector<8x16xf32> to vector<1x1x8x16xf32>
    tpu.vector_store %arg9[%c0_37, %c1_38, %c0_39, %c0_40], %73 {strides = array<i32>} : memref<2x4x8x16xf32, #tpu.memory_space<vmem>>, vector<1x1x8x16xf32>,
    %74 = vector.extract_strided_slice %68 {offsets = [1, 0, 0], sizes = [1, 8, 16], strides = [1, 1, 1]} : vector<2x8x16xf32> to vector<1x8x16xf32>
    %75 = vector.shape_cast %74 : vector<1x8x16xf32> to vector<8x16xf32>
    %c1_41 = arith.constant 1 : index
    %c1_42 = arith.constant 1 : index
    %c0_43 = arith.constant 0 : index
    %c0_44 = arith.constant 0 : index
    %76 = vector.load %arg9[%c1_41, %c1_42, %c0_43, %c0_44] : memref<2x4x8x16xf32, #tpu.memory_space<vmem>>, vector<1x1x8x16xf32>
    %77 = vector.shape_cast %76 : vector<1x1x8x16xf32> to vector<8x16xf32>
    %78 = vector.shape_cast %75 : vector<8x16xf32> to vector<1x1x8x16xf32>
    tpu.vector_store %arg9[%c1_41, %c1_42, %c0_43, %c0_44], %78 {strides = array<i32>} : memref<2x4x8x16xf32, #tpu.memory_space<vmem>>, vector<1x1x8x16xf32>,
    "tpu.trace_start"() <{level = 10 : i32, message = "bqk,bkd->bqd"}> : () -> ()
    %cst_45 = arith.constant dense<0.000000e+00> : vector<2x8x8xf32>
    %79 = tpu.matmul %68, %56, %cst_45 {dimension_numbers = #tpu.dot_dimension_numbers<[2], [1], [1], [2], [0, 0, 0, 1, 1, 2], [0], [0]>} : vector<2x8x16xf32>, vector<2x16x8xf32>, vector<2x8x8xf32> -> vector<2x8x8xf32>
    "tpu.trace_stop"() : () -> ()
    %80 = vector.shape_cast %79 : vector<2x8x8xf32> to vector<16x8xf32>
    %81 = vector.extract_strided_slice %16 {offsets = [0, 16], sizes = [16, 8], strides = [1, 1]} : vector<16x32xf32> to vector<16x8xf32>
    %82 = vector.shape_cast %81 : vector<16x8xf32> to vector<2x8x8xf32>
    %83 = vector.extract_strided_slice %20 {offsets = [0, 16], sizes = [32, 8], strides = [1, 1]} : vector<32x64xf32> to vector<32x8xf32>
    %84 = vector.shape_cast %83 : vector<32x8xf32> to vector<2x16x8xf32>
    %85 = vector.extract_strided_slice %20 {offsets = [0, 48], sizes = [32, 8], strides = [1, 1]} : vector<32x64xf32> to vector<32x8xf32>
    %86 = vector.shape_cast %85 : vector<32x8xf32> to vector<2x16x8xf32>
    "tpu.trace_start"() <{level = 10 : i32, message = "bqd,bkd->bqk"}> : () -> ()
    %cst_46 = arith.constant dense<0.000000e+00> : vector<2x8x16xf32>
    %87 = tpu.matmul %82, %84, %cst_46 {dimension_numbers = #tpu.dot_dimension_numbers<[2], [2], [1], [1], [0, 0, 0, 1, 1, 1], [0], [0]>} : vector<2x8x8xf32>, vector<2x16x8xf32>, vector<2x8x16xf32> -> vector<2x8x16xf32>
    "tpu.trace_stop"() : () -> ()
    %cst_47 = arith.constant 0.353553385 : f32
    %88 = vector.broadcast %cst_47 : f32 to vector<2x8x16xf32>
    %89 = arith.mulf %87, %88 : vector<2x8x16xf32>
    %cst_48 = arith.constant dense<0xFF800000> : vector<2x8xf32>
    %90 = vector.multi_reduction <maximumf>, %89, %cst_48 [2] : vector<2x8x16xf32> to vector<2x8xf32>
    %91 = vector.shape_cast %90 : vector<2x8xf32> to vector<2x8x1xf32>
    %92 = vector.broadcast %91 : vector<2x8x1xf32> to vector<2x8x16xf32>
    %93 = arith.subf %89, %92 : vector<2x8x16xf32>
    %94 = math.exp %93 : vector<2x8x16xf32>
    %cst_49 = arith.constant dense<0.000000e+00> : vector<2x8xf32>
    %95 = vector.multi_reduction <add>, %94, %cst_49 [2] : vector<2x8x16xf32> to vector<2x8xf32>
    %96 = vector.shape_cast %95 : vector<2x8xf32> to vector<2x8x1xf32>
    %97 = vector.broadcast %96 : vector<2x8x1xf32> to vector<2x8x16xf32>
    %98 = arith.divf %94, %97 : vector<2x8x16xf32>
    %99 = vector.extract_strided_slice %98 {offsets = [0, 0, 0], sizes = [1, 8, 16], strides = [1, 1, 1]} : vector<2x8x16xf32> to vector<1x8x16xf32>
    %100 = vector.shape_cast %99 : vector<1x8x16xf32> to vector<8x16xf32>
    %c0_50 = arith.constant 0 : index
    %c2_51 = arith.constant 2 : index
    %c0_52 = arith.constant 0 : index
    %c0_53 = arith.constant 0 : index
    %101 = vector.load %arg9[%c0_50, %c2_51, %c0_52, %c0_53] : memref<2x4x8x16xf32, #tpu.memory_space<vmem>>, vector<1x1x8x16xf32>
    %102 = vector.shape_cast %101 : vector<1x1x8x16xf32> to vector<8x16xf32>
    %103 = vector.shape_cast %100 : vector<8x16xf32> to vector<1x1x8x16xf32>
    tpu.vector_store %arg9[%c0_50, %c2_51, %c0_52, %c0_53], %103 {strides = array<i32>} : memref<2x4x8x16xf32, #tpu.memory_space<vmem>>, vector<1x1x8x16xf32>,
    %104 = vector.extract_strided_slice %98 {offsets = [1, 0, 0], sizes = [1, 8, 16], strides = [1, 1, 1]} : vector<2x8x16xf32> to vector<1x8x16xf32>
    %105 = vector.shape_cast %104 : vector<1x8x16xf32> to vector<8x16xf32>
    %c1_54 = arith.constant 1 : index
    %c2_55 = arith.constant 2 : index
    %c0_56 = arith.constant 0 : index
    %c0_57 = arith.constant 0 : index
    %106 = vector.load %arg9[%c1_54, %c2_55, %c0_56, %c0_57] : memref<2x4x8x16xf32, #tpu.memory_space<vmem>>, vector<1x1x8x16xf32>
    %107 = vector.shape_cast %106 : vector<1x1x8x16xf32> to vector<8x16xf32>
    %108 = vector.shape_cast %105 : vector<8x16xf32> to vector<1x1x8x16xf32>
    tpu.vector_store %arg9[%c1_54, %c2_55, %c0_56, %c0_57], %108 {strides = array<i32>} : memref<2x4x8x16xf32, #tpu.memory_space<vmem>>, vector<1x1x8x16xf32>,
    "tpu.trace_start"() <{level = 10 : i32, message = "bqk,bkd->bqd"}> : () -> ()
    %cst_58 = arith.constant dense<0.000000e+00> : vector<2x8x8xf32>
    %109 = tpu.matmul %98, %86, %cst_58 {dimension_numbers = #tpu.dot_dimension_numbers<[2], [1], [1], [2], [0, 0, 0, 1, 1, 2], [0], [0]>} : vector<2x8x16xf32>, vector<2x16x8xf32>, vector<2x8x8xf32> -> vector<2x8x8xf32>
    "tpu.trace_stop"() : () -> ()
    %110 = vector.shape_cast %109 : vector<2x8x8xf32> to vector<16x8xf32>
    %111 = vector.extract_strided_slice %16 {offsets = [0, 24], sizes = [16, 8], strides = [1, 1]} : vector<16x32xf32> to vector<16x8xf32>
    %112 = vector.shape_cast %111 : vector<16x8xf32> to vector<2x8x8xf32>
    %113 = vector.extract_strided_slice %20 {offsets = [0, 24], sizes = [32, 8], strides = [1, 1]} : vector<32x64xf32> to vector<32x8xf32>
    %114 = vector.shape_cast %113 : vector<32x8xf32> to vector<2x16x8xf32>
    %115 = vector.extract_strided_slice %20 {offsets = [0, 56], sizes = [32, 8], strides = [1, 1]} : vector<32x64xf32> to vector<32x8xf32>
    %116 = vector.shape_cast %115 : vector<32x8xf32> to vector<2x16x8xf32>
    "tpu.trace_start"() <{level = 10 : i32, message = "bqd,bkd->bqk"}> : () -> ()
    %cst_59 = arith.constant dense<0.000000e+00> : vector<2x8x16xf32>
    %117 = tpu.matmul %112, %114, %cst_59 {dimension_numbers = #tpu.dot_dimension_numbers<[2], [2], [1], [1], [0, 0, 0, 1, 1, 1], [0], [0]>} : vector<2x8x8xf32>, vector<2x16x8xf32>, vector<2x8x16xf32> -> vector<2x8x16xf32>
    "tpu.trace_stop"() : () -> ()
    %cst_60 = arith.constant 0.353553385 : f32
    %118 = vector.broadcast %cst_60 : f32 to vector<2x8x16xf32>
    %119 = arith.mulf %117, %118 : vector<2x8x16xf32>
    %cst_61 = arith.constant dense<0xFF800000> : vector<2x8xf32>
    %120 = vector.multi_reduction <maximumf>, %119, %cst_61 [2] : vector<2x8x16xf32> to vector<2x8xf32>
    %121 = vector.shape_cast %120 : vector<2x8xf32> to vector<2x8x1xf32>
    %122 = vector.broadcast %121 : vector<2x8x1xf32> to vector<2x8x16xf32>
    %123 = arith.subf %119, %122 : vector<2x8x16xf32>
    %124 = math.exp %123 : vector<2x8x16xf32>
    %cst_62 = arith.constant dense<0.000000e+00> : vector<2x8xf32>
    %125 = vector.multi_reduction <add>, %124, %cst_62 [2] : vector<2x8x16xf32> to vector<2x8xf32>
    %126 = vector.shape_cast %125 : vector<2x8xf32> to vector<2x8x1xf32>
    %127 = vector.broadcast %126 : vector<2x8x1xf32> to vector<2x8x16xf32>
    %128 = arith.divf %124, %127 : vector<2x8x16xf32>
    %129 = vector.extract_strided_slice %128 {offsets = [0, 0, 0], sizes = [1, 8, 16], strides = [1, 1, 1]} : vector<2x8x16xf32> to vector<1x8x16xf32>
    %130 = vector.shape_cast %129 : vector<1x8x16xf32> to vector<8x16xf32>
    %c0_63 = arith.constant 0 : index
    %c3_64 = arith.constant 3 : index
    %c0_65 = arith.constant 0 : index
    %c0_66 = arith.constant 0 : index
    %131 = vector.load %arg9[%c0_63, %c3_64, %c0_65, %c0_66] : memref<2x4x8x16xf32, #tpu.memory_space<vmem>>, vector<1x1x8x16xf32>
    %132 = vector.shape_cast %131 : vector<1x1x8x16xf32> to vector<8x16xf32>
    %133 = vector.shape_cast %130 : vector<8x16xf32> to vector<1x1x8x16xf32>
    tpu.vector_store %arg9[%c0_63, %c3_64, %c0_65, %c0_66], %133 {strides = array<i32>} : memref<2x4x8x16xf32, #tpu.memory_space<vmem>>, vector<1x1x8x16xf32>,
    %134 = vector.extract_strided_slice %128 {offsets = [1, 0, 0], sizes = [1, 8, 16], strides = [1, 1, 1]} : vector<2x8x16xf32> to vector<1x8x16xf32>
    %135 = vector.shape_cast %134 : vector<1x8x16xf32> to vector<8x16xf32>
    %c1_67 = arith.constant 1 : index
    %c3_68 = arith.constant 3 : index
    %c0_69 = arith.constant 0 : index
    %c0_70 = arith.constant 0 : index
    %136 = vector.load %arg9[%c1_67, %c3_68, %c0_69, %c0_70] : memref<2x4x8x16xf32, #tpu.memory_space<vmem>>, vector<1x1x8x16xf32>
    %137 = vector.shape_cast %136 : vector<1x1x8x16xf32> to vector<8x16xf32>
    %138 = vector.shape_cast %135 : vector<8x16xf32> to vector<1x1x8x16xf32>
    tpu.vector_store %arg9[%c1_67, %c3_68, %c0_69, %c0_70], %138 {strides = array<i32>} : memref<2x4x8x16xf32, #tpu.memory_space<vmem>>, vector<1x1x8x16xf32>,
    "tpu.trace_start"() <{level = 10 : i32, message = "bqk,bkd->bqd"}> : () -> ()
    %cst_71 = arith.constant dense<0.000000e+00> : vector<2x8x8xf32>
    %139 = tpu.matmul %128, %116, %cst_71 {dimension_numbers = #tpu.dot_dimension_numbers<[2], [1], [1], [2], [0, 0, 0, 1, 1, 2], [0], [0]>} : vector<2x8x16xf32>, vector<2x16x8xf32>, vector<2x8x8xf32> -> vector<2x8x8xf32>
    "tpu.trace_stop"() : () -> ()
    %140 = vector.shape_cast %139 : vector<2x8x8xf32> to vector<16x8xf32>
    %141 = tpu.concatenate %50, %80, %110, %140 in 1 : vector<16x8xf32>, vector<16x8xf32>, vector<16x8xf32>, vector<16x8xf32> -> vector<16x32xf32>
    %c0_72 = arith.constant 0 : index
    %c0_73 = arith.constant 0 : index
    %142 = vector.load %arg4[%c0_72, %c0_73] : memref<32x32xf32, #tpu.memory_space<vmem>>, vector<32x32xf32>
    %cst_74 = arith.constant dense<0.000000e+00> : vector<16x32xf32>
    %143 = tpu.matmul %141, %142, %cst_74 {dimension_numbers = #tpu.dot_dimension_numbers<[1], [0], [0], [1], [0, 0, 1, 1], [], []>} : vector<16x32xf32>, vector<32x32xf32>, vector<16x32xf32> -> vector<16x32xf32>
    %144 = vector.broadcast %2 : vector<1x32xf32> to vector<16x32xf32>
    %145 = arith.addf %143, %144 : vector<16x32xf32>
    %146 = arith.addf %10, %145 : vector<16x32xf32>
    %cst_75 = arith.constant dense<0.000000e+00> : vector<16xf32>
    %147 = vector.multi_reduction <add>, %146, %cst_75 [1] : vector<16x32xf32> to vector<16xf32>
    %148 = vector.shape_cast %147 : vector<16xf32> to vector<16x1xf32>
    %cst_76 = arith.constant 3.200000e+01 : f32
    %149 = vector.broadcast %cst_76 : f32 to vector<16x1xf32>
    %150 = arith.divf %148, %149 : vector<16x1xf32>
    %151 = vector.broadcast %150 : vector<16x1xf32> to vector<16x32xf32>
    %152 = arith.subf %146, %151 : vector<16x32xf32>
    %153 = arith.mulf %152, %152 : vector<16x32xf32>
    %cst_77 = arith.constant dense<0.000000e+00> : vector<16xf32>
    %154 = vector.multi_reduction <add>, %153, %cst_77 [1] : vector<16x32xf32> to vector<16xf32>
    %155 = vector.shape_cast %154 : vector<16xf32> to vector<16x1xf32>
    %cst_78 = arith.constant 3.200000e+01 : f32
    %156 = vector.broadcast %cst_78 : f32 to vector<16x1xf32>
    %157 = arith.divf %155, %156 : vector<16x1xf32>
    %158 = vector.broadcast %150 : vector<16x1xf32> to vector<16x32xf32>
    %159 = arith.subf %146, %158 : vector<16x32xf32>
    %cst_79 = arith.constant 9.99999974E-6 : f32
    %160 = vector.broadcast %cst_79 : f32 to vector<16x1xf32>
    %161 = arith.addf %157, %160 : vector<16x1xf32>
    %162 = math.rsqrt %161 : vector<16x1xf32>
    %163 = vector.broadcast %162 : vector<16x1xf32> to vector<16x32xf32>
    %164 = arith.mulf %159, %163 : vector<16x32xf32>
    %165 = vector.broadcast %5 : vector<1x32xf32> to vector<16x32xf32>
    %166 = arith.mulf %164, %165 : vector<16x32xf32>
    %167 = vector.broadcast %6 : vector<1x32xf32> to vector<16x32xf32>
    %168 = arith.addf %166, %167 : vector<16x32xf32>
    %c0_80 = arith.constant 0 : index
    %c0_81 = arith.constant 0 : index
    %169 = vector.load %arg5[%c0_80, %c0_81] : memref<32x64xf32, #tpu.memory_space<vmem>>, vector<32x64xf32>
    %cst_82 = arith.constant dense<0.000000e+00> : vector<16x64xf32>
    %170 = tpu.matmul %168, %169, %cst_82 {dimension_numbers = #tpu.dot_dimension_numbers<[1], [0], [0], [1], [0, 0, 1, 1], [], []>} : vector<16x32xf32>, vector<32x64xf32>, vector<16x64xf32> -> vector<16x64xf32>
    %171 = vector.broadcast %3 : vector<1x64xf32> to vector<16x64xf32>
    %172 = arith.addf %170, %171 : vector<16x64xf32>
    %cst_83 = arith.constant 0.000000e+00 : f32
    %173 = vector.broadcast %cst_83 : f32 to vector<16x64xf32>
    %174 = arith.maximumf %172, %173 : vector<16x64xf32>
    %c0_84 = arith.constant 0 : index
    %c0_85 = arith.constant 0 : index
    %175 = vector.load %arg6[%c0_84, %c0_85] : memref<64x32xf32, #tpu.memory_space<vmem>>, vector<64x32xf32>
    %cst_86 = arith.constant dense<0.000000e+00> : vector<16x32xf32>
    %176 = tpu.matmul %174, %175, %cst_86 {dimension_numbers = #tpu.dot_dimension_numbers<[1], [0], [0], [1], [0, 0, 1, 1], [], []>} : vector<16x64xf32>, vector<64x32xf32>, vector<16x32xf32> -> vector<16x32xf32>
    %177 = vector.broadcast %4 : vector<1x32xf32> to vector<16x32xf32>
    %178 = arith.addf %176, %177 : vector<16x32xf32>
    %179 = arith.addf %168, %178 : vector<16x32xf32>
    %cst_87 = arith.constant dense<0.000000e+00> : vector<16xf32>
    %180 = vector.multi_reduction <add>, %179, %cst_87 [1] : vector<16x32xf32> to vector<16xf32>
    %181 = vector.shape_cast %180 : vector<16xf32> to vector<16x1xf32>
    %cst_88 = arith.constant 3.200000e+01 : f32
    %182 = vector.broadcast %cst_88 : f32 to vector<16x1xf32>
    %183 = arith.divf %181, %182 : vector<16x1xf32>
    %184 = vector.broadcast %183 : vector<16x1xf32> to vector<16x32xf32>
    %185 = arith.subf %179, %184 : vector<16x32xf32>
    %186 = arith.mulf %185, %185 : vector<16x32xf32>
    %cst_89 = arith.constant dense<0.000000e+00> : vector<16xf32>
    %187 = vector.multi_reduction <add>, %186, %cst_89 [1] : vector<16x32xf32> to vector<16xf32>
    %188 = vector.shape_cast %187 : vector<16xf32> to vector<16x1xf32>
    %cst_90 = arith.constant 3.200000e+01 : f32
    %189 = vector.broadcast %cst_90 : f32 to vector<16x1xf32>
    %190 = arith.divf %188, %189 : vector<16x1xf32>
    %191 = vector.broadcast %183 : vector<16x1xf32> to vector<16x32xf32>
    %192 = arith.subf %179, %191 : vector<16x32xf32>
    %cst_91 = arith.constant 9.99999974E-6 : f32
    %193 = vector.broadcast %cst_91 : f32 to vector<16x1xf32>
    %194 = arith.addf %190, %193 : vector<16x1xf32>
    %195 = math.rsqrt %194 : vector<16x1xf32>
    %196 = vector.broadcast %195 : vector<16x1xf32> to vector<16x32xf32>
    %197 = arith.mulf %192, %196 : vector<16x32xf32>
    %198 = vector.broadcast %7 : vector<1x32xf32> to vector<16x32xf32>
    %199 = arith.mulf %197, %198 : vector<16x32xf32>
    %200 = vector.broadcast %8 : vector<1x32xf32> to vector<16x32xf32>
    %201 = arith.addf %199, %200 : vector<16x32xf32>
    %202 = vector.shape_cast %201 : vector<16x32xf32> to vector<2x8x32xf32>
    %c0_92 = arith.constant 0 : index
    %c0_93 = arith.constant 0 : index
    %c0_94 = arith.constant 0 : index
    %203 = vector.load %arg8[%c0_92, %c0_93, %c0_94] : memref<2x8x32xf32, #tpu.memory_space<vmem>>, vector<2x8x32xf32>
    tpu.vector_store %arg8[%c0_92, %c0_93, %c0_94], %202 {strides = array<i32>} : memref<2x8x32xf32, #tpu.memory_space<vmem>>, vector<2x8x32xf32>,
    return
  }
}

</mosaic_0001>

<bundles_post_ra>
// kernel: decoder_layer.1
= control target key start
LH: loop header
LB: loop body
LE: loop exit
PB: predicated region body
PF: predicated region fallthrough
CT: control target
= control target key end

     0   :  { %15 = vsyncpa [#allocation3], 0  ;;  %vm56_vm0 = vcmask 261120   ;;  %s3054_s0 = inlined_call_operand.vmem [shape: f32[2,8,32], index: 0, kind: input, shape index: {}]   ;;  %s3055_s1 = inlined_call_operand.vmem [shape: f32[2,16,32], index: 1, kind: input, shape index: {}]   ;;  %s3056_s2 = inlined_call_operand.vmem [shape: f32[32,32], index: 2, kind: input, shape index: {}]   ;;  %s3057_s3 = inlined_call_operand.vmem [shape: f32[32,64], index: 3, kind: input, shape index: {}]   ;;  %s3058_s4 = inlined_call_operand.vmem [shape: f32[32,32], index: 4, kind: input, shape index: {}]   ;;  %s3059_s5 = inlined_call_operand.vmem [shape: f32[32,64], index: 5, kind: input, shape index: {}]   ;;  %s3060_s6 = inlined_call_operand.vmem [shape: f32[64,32], index: 6, kind: input, shape index: {}]   ;;  %s3061_s7 = inlined_call_operand.vmem [shape: f32[9,64], index: 7, kind: input, shape index: {}]   ;;  %s3062_s8 = inlined_call_operand.hbm [shape: f32[2,8,32], index: 8, kind: output, shape index: {0}]   ;;  %s3063_s9 = inlined_call_operand.hbm [shape: f32[2,4,8,16], index: 9, kind: output, shape index: {1}]  }
   0x1   :  { %v48_v0 = vld [vmem:[%s3056_s2] sm:$0xff]  ;;  %v49_v1 = vld [vmem:[%s3056_s2 + $0x8] sm:$0xff]  ;;  %v50_v2 = vld [vmem:[%s3056_s2 + $0x10] sm:$0xff] }
   0x2   :  { %v2373_v3 = vpack.c.bf16 %v49_v1, %v48_v0  ;;  %v51_v4 = vld [vmem:[%s3056_s2 + $0x18] sm:$0xff]  ;;  %v2732_v5 = vld [vmem:[%s3054_s0] sm:$0xff]  ;;  %v139_v8 = vld [vmem:[%s3057_s3 + $0x8] sm:$0xff] }
   0x3   :  { %v2377_v6 = vpack.c.bf16 %v51_v4, %v50_v2  ;;  %2203 = vmatprep.mubr.msk.f32.mxu1 %vm56_vm0, %v2732_v5  ;;  %v138_v7 = vld [vmem:[%s3057_s3] sm:$0xff] }
   0x4   :  { %2374 = vmatprep.subr.bf16.mxu1 %v2373_v3 }
   0x5   :  { %2376 = vmatpush3.bf16.msra.mxu1 %v2373_v3 }
   0x6   :  { %16 = vsyncpa [#allocation5], 0  ;;  %2378 = vmatprep.subr.bf16.mxu1 %v2377_v6  ;;  %v2381_v9 = vpack.c.bf16 %v139_v8, %v138_v7  ;;  %v140_v10 = vld [vmem:[%s3057_s3 + $0x10] sm:$0xff]  ;;  %v141_v11 = vld [vmem:[%s3057_s3 + $0x18] sm:$0xff]  ;;  %v2651_v18 = vmov 0.0|0.0   ;;  %vm2652_vm1 = vmmov 0  }
   0x7   :  { %v2751_v12 = vld [vmem:[%s3054_s0 + $0x8] sm:$0xff]  ;;  %v2385_v13 = vpack.c.bf16 %v141_v11, %v140_v10  ;;  %v44_v14 = vld [vmem:[%s3055_s1] sm:$0xff]  ;;  %v46_v16 = vld [vmem:[%s3055_s1 + $0x10] sm:$0xff]  ;;  %2389 = vmatprep.subr.bf16.mxu0 %v2651_v18  ;;  %v2653_v19 = vmov 0.0   ;;  %vm243_vm2 = vcmask 64512   ;;  %s2654_s16 = smov 96  }
   0x8   :  { %v45_v15 = vld [vmem:[%s3055_s1 + $0x8] sm:$0xff]  ;;  %v47_v17 = vld [vmem:[%s3055_s1 + $0x18] sm:$0xff]  ;;  %2224 = vmatprep.mubr.msk.f32.mxu0 %vm2652_vm1, %v2653_v19  ;;  %v2061_v22 = vld [vmem:[%s3061_s7 + $0x1] ss:$0 sm:$0xff]  ;;  %s2655_s17 = smov 120   ;;  %vm404_vm4 = vcmask 130048  }
   0x9   :  { %2380 = vmatpush3.bf16.msra.mxu1 %v2377_v6  ;;  %vm2782_vm3 = vmpackc.low %vm243_vm2, %vm243_vm2  ;;  %v2058_v34 = vld [vmem:[%s3061_s7] ss:$0 sm:$0xff]  ;;  %s2656_s18 = smov 88   ;;  %s2657_s19 = smov 112   ;;  %vm1666_vm5 = vcmask 195584   ;;  %vm1902_vm6 = vcmask 523264  }
   0xa   :  { %2382 = vmatprep.subr.bf16.mxu1 %v2381_v9  ;;  %s2658_s20 = smov 80   ;;  %s2659_s21 = smov 104  }
   0xb   :  { %s2660_s22 = smov 72   ;;  %s2661_s2 = smov 8  }
   0xc   :  { %2204 = vmatmul.mubr.msk.f32.vlgmr.msra.gmra.mrb[0].mxu1 %vm56_vm0, %v2751_v12  ;;  %s2662_s23 = smov 16   ;;  %s2663_s0 = smov 24  }
   0xd   :  { %2384 = vmatpush3.bf16.msra.mxu1 %v2381_v9  ;;  %2214 = vmatprep.mubr.msk.f32.mxu1 %vm56_vm0, %v44_v14 }
   0xe   :  { %2386 = vmatprep.subr.bf16.mxu1 %v2385_v13 }
  0x11   :  { %2388 = vmatpush3.bf16.msra.mxu1 %v2385_v13 }
  0x12   :  { %2393 = vmatprep.subr.bf16.mxu1 %v2651_v18 }
  0x14   :  { %2215 = vmatmul.mubr.msk.f32.vlgmr.msra.gmra.mrb[2].mxu1 %vm56_vm0, %v45_v15 }
  0x15   :  { %2217 = vmatprep.mubr.msk.f32.mxu1 %vm56_vm0, %v46_v16 }
  0x18   :  { %2218 = vmatmul.mubr.msk.f32.gmra.mrb[4].mxu1 %vm56_vm0, %v47_v17 }
  0x19   :  { %2231 = vmatprep.mubr.msk.f32.mxu1 %vm2652_vm1, %v2653_v19 }
  0xdf   :  { %v2205_v20 = vpop.f32.mrb[0].mxu1 }
  0xe0   :  { %v129_v21 = vpop.f32.mrb[1].mxu1  ;;  %v2808_v38 = vadd.f32 %v2205_v20, %v2058_v34 }
  0xe1   :  { %v2799_v37 = vadd.f32 %v2058_v34, %v129_v21 }
  0xe7   :  { %v2216_v23 = vpop.f32.mrb[2].mxu1 }
  0xe8   :  { %v230_v24 = vadd.f32 %v2216_v23, %v2061_v22  ;;  %v224_v25 = vpop.f32.mrb[3].mxu1 }
  0xe9   :  { %v225_v26 = vadd.f32 %v2061_v22, %v224_v25 }
  0xeb   :  { %v2219_v28 = vpop.f32.mrb[4].mxu1  ;;  %v2390_v29 = vpack.c.bf16 %v230_v24, %v225_v26  ;;  %v2786_v30 = vpack.i.bf16 %v230_v24, %v225_v26 }
  0xec   :  { %v240_v31 = vadd.f32 %v2219_v28, %v2061_v22  ;;  %v234_v32 = vpop.f32.mrb[5].mxu1 }
  0xed   :  { %v235_v33 = vadd.f32 %v2061_v22, %v234_v32  ;;  %2392 = vmatpush3.bf16.xpose.msk.msra.mxu0 %vm2782_vm3, %v2390_v29 }
  0xee   :  { %2397 = vmatprep.subr.bf16.mxu0 %v2651_v18 }
  0xef   :  { %v2794_v35 = vpack.i.bf16 %v240_v31, %v235_v33  ;;  %v2394_v36 = vpack.c.bf16 %v240_v31, %v235_v33 }
  0xf1   :  { %2499 = vrot.lane.b32.xlu1 %v2794_v35, %s2654_s16  ;;  %2396 = vmatpush3.bf16.xpose.msk.msra.mxu1 %vm2782_vm3, %v2394_v36 }
  0xf2   :  { %2400 = vmatprep.subr.bf16.mxu1 %v2651_v18 }
  0xf4   :  { %2225 = vmatmul.mubr.msk.f32.vlgmr.msra.gmra.mrb[0].mxu0 %vm243_vm2, %v2799_v37 }
  0xf5   :  { %2504 = vrot.lane.b32.xlu1 %v2786_v30, %s2655_s17  ;;  %2238 = vmatprep.mubr.msk.f32.mxu0 %vm2652_vm1, %v2653_v19 }
  0xf8   :  { %2232 = vmatmul.mubr.msk.f32.vlgmr.msra.gmra.mrb[6].mxu1 %vm243_vm2, %v2808_v38 }
  0xf9   :  { %2509 = vrot.lane.b32.xlu1 %v2794_v35, %s2655_s17  ;;  %2245 = vmatprep.mubr.msk.f32.mxu1 %vm2652_vm1, %v2653_v19 }
 0x163   :  { %v2500_v39 = vpop.permute.xlu1 %2499 }
 0x164   :  { %v2502_v40 = vunpack.i.h.bf16 %v2500_v39  ;;  %v2501_v41 = vunpack.i.l.bf16 %v2500_v39 }
 0x166   :  { %v2401_v42 = vpack.c.bf16 %v2502_v40, %v2501_v41 }
 0x167   :  { %v2505_v1 = vpop.permute.xlu1 %2504 }
 0x168   :  { %2402 = vmatpush3.bf16.msra.mxu1 %v2401_v42  ;;  %v2507_v6 = vunpack.i.h.bf16 %v2505_v1  ;;  %v2506_v7 = vunpack.i.l.bf16 %v2505_v1 }
 0x169   :  { %2407 = vmatprep.subr.bf16.mxu1 %v2651_v18 }
 0x16a   :  { %v2404_v10 = vpack.c.bf16 %v2507_v6, %v2506_v7 }
 0x16b   :  { %v2510_v2 = vpop.permute.xlu1 %2509 }
 0x16c   :  { %v2512_v11 = vunpack.i.h.bf16 %v2510_v2  ;;  %v2511_v13 = vunpack.i.l.bf16 %v2510_v2 }
 0x16e   :  { %v2408_v16 = vpack.c.bf16 %v2512_v11, %v2511_v13 }
 0x1c7   :  { %v319_v43 = vpop.f32.mrb[0].mxu0 }
 0x1c8   :  { %v402_v44 = vmul.f32 0.35355338, %v319_v43  ;;  %v2226_v45 = vpop.f32.mrb[1].mxu0 }
 0x1ca   :  { %v405_v46 = vsel %vm404_vm4, %v402_v44, -inf }
 0x1cb   :  { %v398_v47 = vpop.f32.mrb[6].mxu1  ;;  %406 = vmax.xlane.f32.xlu0 %v405_v46 }
 0x1cc   :  { %v403_v48 = vmul.f32 0.35355338, %v398_v47  ;;  %v2233_v49 = vpop.f32.mrb[7].mxu1 }
 0x1ce   :  { %v408_v50 = vsel %vm404_vm4, %v403_v48, -inf }
 0x1cf   :  { %409 = vmax.xlane.f32.xlu0 %v408_v50 }
 0x1e5   :  { %2494 = vrot.lane.b32.xlu0 %v2786_v30, %s2654_s16 }
 0x1e9   :  { %588 = vrot.lane.b32.xlu0 %v2799_v37, %s2655_s17 }
 0x258   :  { %v407_v51 = vpop.xlane.xlu0 %406 }
 0x259   :  { %v411_v52 = vsub.f32 %v402_v44, %v407_v51 }
 0x25b   :  { %v413_v53 = vmul.f32 1.442695, %v411_v52 }
 0x25c   :  { %v410_v54 = vpop.xlane.xlu0 %409 }
 0x25d   :  { %2563 = vpow2.f32 %v413_v53  ;;  %v412_v55 = vsub.f32 %v403_v48, %v410_v54 }
 0x25f   :  { %v415_v56 = vmul.f32 1.442695, %v412_v55 }
 0x260   :  { %v2495_v57 = vpop.permute.xlu0 %2494 }
 0x261   :  { %2565 = vpow2.f32 %v415_v56  ;;  %v2497_v58 = vunpack.i.h.bf16 %v2495_v57  ;;  %v2496_v59 = vunpack.i.l.bf16 %v2495_v57 }
 0x263   :  { %v2398_v60 = vpack.c.bf16 %v2497_v58, %v2496_v59 }
 0x264   :  { %v589_v17 = vpop.permute.xlu0 %588 }
 0x265   :  { %2399 = vmatpush3.bf16.msra.mxu0 %v2398_v60 }
 0x266   :  { %2403 = vmatprep.subr.bf16.mxu0 %v2651_v18 }
 0x267   :  { %v2564_v61 = vpop.eup %2563 }
 0x268   :  { %v417_v62 = vsel %vm404_vm4, %v2564_v61, 0.0 }
 0x269   :  { %418 = vadd.xlane.f32.xlu1 %v417_v62 }
 0x26b   :  { %v2566_v63 = vpop.eup %2565 }
 0x26c   :  { %v420_v0 = vsel %vm404_vm4, %v2566_v63, 0.0 }
 0x26d   :  { %421 = vadd.xlane.f32.xlu1 %v420_v0 }
 0x27e   :  { %670 = vrot.lane.b32.xlu1 %v2808_v38, %s2655_s17 }
 0x2f6   :  { %v419_v3 = vpop.xlane.xlu1 %418 }
 0x2f7   :  { %2567 = vrcp.f32 %v419_v3 }
 0x2fa   :  { %v422_v4 = vpop.xlane.xlu1 %421 }
 0x2fb   :  { %2569 = vrcp.f32 %v422_v4 }
 0x2fe   :  { %v671_v20 = vpop.permute.xlu1 %670 }
 0x301   :  { %v2568_v8 = vpop.eup %2567 }
 0x302   :  { %v424_v9 = vmul.f32 %v2568_v8, %v2564_v61 }
 0x304   :  { %427 = vst.msk [vmem:[#allocation4] sm:$0xff] %vm404_vm4, %v424_v9  ;;  %2239 = vmatmul.mubr.msk.f32.vlgmr.msra.gmra.mrb[2].mxu0 %vm404_vm4, %v424_v9 }
 0x305   :  { %v2570_v14 = vpop.eup %2569  ;;  %2406 = vmatpush3.bf16.xpose.msk.msra.mxu0 %vm2782_vm3, %v2404_v10  ;;  %2252 = vmatprep.mubr.msk.f32.mxu0 %vm2652_vm1, %v2653_v19 }
 0x306   :  { %v426_v15 = vmul.f32 %v2570_v14, %v2566_v63  ;;  %2411 = vmatprep.subr.bf16.mxu0 %v2651_v18 }
 0x308   :  { %429 = vst.msk [vmem:[#allocation4 + $0x20] sm:$0xff] %vm404_vm4, %v426_v15  ;;  %2246 = vmatmul.mubr.msk.f32.vlgmr.msra.gmra.mrb[8].mxu1 %vm404_vm4, %v426_v15 }
 0x309   :  { %2410 = vmatpush3.bf16.xpose.msk.msra.mxu1 %vm2782_vm3, %v2408_v16  ;;  %2259 = vmatprep.mubr.msk.f32.mxu1 %vm2652_vm1, %v2653_v19 }
 0x30a   :  { %2414 = vmatprep.subr.bf16.mxu1 %v2651_v18 }
 0x30c   :  { %2253 = vmatmul.mubr.msk.f32.vlgmr.msra.gmra.mrb[4].mxu0 %vm243_vm2, %v589_v17 }
 0x30d   :  { %2266 = vmatprep.mubr.msk.f32.mxu0 %vm2652_vm1, %v2653_v19 }
 0x310   :  { %2260 = vmatmul.mubr.msk.f32.vlgmr.msra.gmra.mrb[10].mxu1 %vm243_vm2, %v671_v20 }
 0x311   :  { %2273 = vmatprep.mubr.msk.f32.mxu1 %vm2652_vm1, %v2653_v19 }
 0x3d7   :  { %v2847_v21 = vpop.f32.mrb[2].mxu0 }
 0x3d8   :  { %v2240_v22 = vpop.f32.mrb[3].mxu0 }
 0x3db   :  { %v2849_v23 = vpop.f32.mrb[8].mxu1 }
 0x3dc   :  { %v2247_v24 = vpop.f32.mrb[9].mxu1 }
 0x3df   :  { %v666_v25 = vpop.f32.mrb[4].mxu0 }
 0x3e0   :  { %v752_v26 = vmul.f32 0.35355338, %v666_v25  ;;  %v2254_v28 = vpop.f32.mrb[5].mxu0 }
 0x3e2   :  { %v754_v29 = vsel %vm404_vm4, %v752_v26, -inf }
 0x3e3   :  { %v748_v31 = vpop.f32.mrb[10].mxu1  ;;  %755 = vmax.xlane.f32.xlu0 %v754_v29 }
 0x3e4   :  { %v753_v32 = vmul.f32 0.35355338, %v748_v31  ;;  %v2261_v33 = vpop.f32.mrb[11].mxu1 }
 0x3e6   :  { %v757_v34 = vsel %vm404_vm4, %v753_v32, -inf }
 0x3e7   :  { %758 = vmax.xlane.f32.xlu1 %v757_v34 }
 0x3f8   :  { %2519 = vrot.lane.b32.xlu1 %v2794_v35, %s2656_s18 }
 0x3fc   :  { %2524 = vrot.lane.b32.xlu1 %v2786_v30, %s2657_s19 }
 0x400   :  { %2529 = vrot.lane.b32.xlu1 %v2794_v35, %s2657_s19 }
 0x404   :  { %1020 = vrot.lane.b32.xlu1 %v2808_v38, %s2657_s19 }
 0x470   :  { %v756_v36 = vpop.xlane.xlu0 %755 }
 0x471   :  { %v760_v39 = vsub.f32 %v752_v26, %v756_v36 }
 0x473   :  { %v762_v40 = vmul.f32 1.442695, %v760_v39 }
 0x474   :  { %v759_v41 = vpop.xlane.xlu1 %758 }
 0x475   :  { %2571 = vpow2.f32 %v762_v40  ;;  %v761_v42 = vsub.f32 %v753_v32, %v759_v41 }
 0x477   :  { %v764_v43 = vmul.f32 1.442695, %v761_v42 }
 0x478   :  { %v2520_v44 = vpop.permute.xlu1 %2519 }
 0x479   :  { %2573 = vpow2.f32 %v764_v43  ;;  %v2522_v45 = vunpack.i.h.bf16 %v2520_v44  ;;  %v2521_v46 = vunpack.i.l.bf16 %v2520_v44 }
 0x47b   :  { %v2415_v47 = vpack.c.bf16 %v2522_v45, %v2521_v46 }
 0x47c   :  { %v2525_v53 = vpop.permute.xlu1 %2524 }
 0x47d   :  { %2416 = vmatpush3.bf16.msra.mxu1 %v2415_v47  ;;  %v2527_v1 = vunpack.i.h.bf16 %v2525_v53  ;;  %v2526_v2 = vunpack.i.l.bf16 %v2525_v53 }
 0x47e   :  { %2421 = vmatprep.subr.bf16.mxu1 %v2651_v18 }
 0x47f   :  { %v2572_v48 = vpop.eup %2571  ;;  %v2418_v6 = vpack.c.bf16 %v2527_v1, %v2526_v2 }
 0x480   :  { %v766_v49 = vsel %vm404_vm4, %v2572_v48, 0.0  ;;  %v2530_v58 = vpop.permute.xlu1 %2529 }
 0x481   :  { %767 = vadd.xlane.f32.xlu0 %v766_v49  ;;  %v2532_v62 = vunpack.i.h.bf16 %v2530_v58  ;;  %v2531_v63 = vunpack.i.l.bf16 %v2530_v58 }
 0x483   :  { %v2574_v50 = vpop.eup %2573  ;;  %v2422_v4 = vpack.c.bf16 %v2532_v62, %v2531_v63 }
 0x484   :  { %v769_v51 = vsel %vm404_vm4, %v2574_v50, 0.0  ;;  %v1021_v7 = vpop.permute.xlu1 %1020 }
 0x485   :  { %770 = vadd.xlane.f32.xlu0 %v769_v51 }
 0x49b   :  { %2514 = vrot.lane.b32.xlu0 %v2786_v30, %s2656_s18 }
 0x49f   :  { %938 = vrot.lane.b32.xlu0 %v2799_v37, %s2657_s19 }
 0x50e   :  { %v768_v52 = vpop.xlane.xlu0 %767 }
 0x50f   :  { %2575 = vrcp.f32 %v768_v52 }
 0x512   :  { %v771_v54 = vpop.xlane.xlu0 %770 }
 0x513   :  { %2577 = vrcp.f32 %v771_v54 }
 0x516   :  { %v2515_v55 = vpop.permute.xlu0 %2514 }
 0x517   :  { %v2517_v56 = vunpack.i.h.bf16 %v2515_v55  ;;  %v2516_v57 = vunpack.i.l.bf16 %v2515_v55 }
 0x519   :  { %v2576_v59 = vpop.eup %2575  ;;  %v2412_v60 = vpack.c.bf16 %v2517_v56, %v2516_v57 }
 0x51a   :  { %v773_v61 = vmul.f32 %v2576_v59, %v2572_v48  ;;  %v939_v8 = vpop.permute.xlu0 %938 }
 0x51b   :  { %2413 = vmatpush3.bf16.msra.mxu0 %v2412_v60 }
 0x51c   :  { %777 = vst.msk [vmem:[#allocation4 + $0x8] sm:$0xff] %vm404_vm4, %v773_v61  ;;  %2417 = vmatprep.subr.bf16.mxu0 %v2651_v18 }
 0x51d   :  { %v2578_v0 = vpop.eup %2577 }
 0x51e   :  { %v775_v3 = vmul.f32 %v2578_v0, %v2574_v50  ;;  %2267 = vmatmul.mubr.msk.f32.vlgmr.msra.gmra.mrb[6].mxu0 %vm404_vm4, %v773_v61 }
 0x51f   :  { %2280 = vmatprep.mubr.msk.f32.mxu0 %vm2652_vm1, %v2653_v19 }
 0x520   :  { %779 = vst.msk [vmem:[#allocation4 + $0x28] sm:$0xff] %vm404_vm4, %v775_v3  ;;  %2274 = vmatmul.mubr.msk.f32.vlgmr.msra.gmra.mrb[12].mxu1 %vm404_vm4, %v775_v3 }
 0x521   :  { %2424 = vmatpush3.bf16.xpose.msk.msra.mxu1 %vm2782_vm3, %v2422_v4  ;;  %2287 = vmatprep.mubr.msk.f32.mxu1 %vm2652_vm1, %v2653_v19 }
 0x522   :  { %2428 = vmatprep.subr.bf16.mxu1 %v2651_v18 }
 0x524   :  { %2420 = vmatpush3.bf16.xpose.msk.msra.mxu0 %vm2782_vm3, %v2418_v6 }
 0x525   :  { %2425 = vmatprep.subr.bf16.mxu0 %v2651_v18 }
 0x528   :  { %2288 = vmatmul.mubr.msk.f32.vlgmr.msra.gmra.mrb[14].mxu1 %vm243_vm2, %v1021_v7 }
 0x529   :  { %2301 = vmatprep.mubr.msk.f32.mxu1 %vm2652_vm1, %v2653_v19 }
 0x52b   :  { %2281 = vmatmul.mubr.msk.f32.vlgmr.msra.gmra.mrb[8].mxu0 %vm243_vm2, %v939_v8 }
 0x52c   :  { %2294 = vmatprep.mubr.msk.f32.mxu0 %vm2652_vm1, %v2653_v19 }
 0x5f1   :  { %v2883_v9 = vpop.f32.mrb[6].mxu0 }
 0x5f2   :  { %v2268_v10 = vpop.f32.mrb[7].mxu0 }
 0x5f3   :  { %v2885_v11 = vpop.f32.mrb[12].mxu1 }
 0x5f4   :  { %v2275_v13 = vpop.f32.mrb[13].mxu1 }
 0x5fb   :  { %v1098_v14 = vpop.f32.mrb[14].mxu1 }
 0x5fc   :  { %v1103_v15 = vmul.f32 0.35355338, %v1098_v14  ;;  %v2289_v16 = vpop.f32.mrb[15].mxu1 }
 0x5fe   :  { %v1107_v17 = vsel %vm404_vm4, %v1103_v15, -inf  ;;  %v1016_v20 = vpop.f32.mrb[8].mxu0 }
 0x5ff   :  { %1108 = vmax.xlane.f32.xlu1 %v1107_v17  ;;  %v1102_v22 = vmul.f32 0.35355338, %v1016_v20  ;;  %v2282_v24 = vpop.f32.mrb[9].mxu0 }
 0x601   :  { %v1104_v25 = vsel %vm404_vm4, %v1102_v22, -inf }
 0x602   :  { %1105 = vmax.xlane.f32.xlu0 %v1104_v25 }
 0x610   :  { %2539 = vrot.lane.b32.xlu1 %v2794_v35, %s2658_s20 }
 0x614   :  { %2544 = vrot.lane.b32.xlu1 %v2786_v30, %s2659_s21 }
 0x618   :  { %2549 = vrot.lane.b32.xlu1 %v2794_v35, %s2659_s21 }
 0x61c   :  { %1370 = vrot.lane.b32.xlu1 %v2808_v38, %s2659_s21 }
 0x68c   :  { %v1109_v26 = vpop.xlane.xlu1 %1108 }
 0x68d   :  { %v1111_v28 = vsub.f32 %v1103_v15, %v1109_v26 }
 0x68f   :  { %v1106_v29 = vpop.xlane.xlu0 %1105  ;;  %v1114_v36 = vmul.f32 1.442695, %v1111_v28 }
 0x690   :  { %v2540_v31 = vpop.permute.xlu1 %2539  ;;  %v1110_v32 = vsub.f32 %v1102_v22, %v1106_v29 }
 0x691   :  { %v2542_v33 = vunpack.i.h.bf16 %v2540_v31  ;;  %v2541_v34 = vunpack.i.l.bf16 %v2540_v31 }
 0x692   :  { %v1112_v39 = vmul.f32 1.442695, %v1110_v32 }
 0x693   :  { %v2429_v40 = vpack.c.bf16 %v2542_v33, %v2541_v34 }
 0x694   :  { %2579 = vpow2.f32 %v1112_v39  ;;  %v2545_v45 = vpop.permute.xlu1 %2544 }
 0x695   :  { %2430 = vmatpush3.bf16.msra.mxu1 %v2429_v40  ;;  %2581 = vpow2.f32 %v1114_v36  ;;  %v2547_v56 = vunpack.i.h.bf16 %v2545_v45  ;;  %v2546_v57 = vunpack.i.l.bf16 %v2545_v45 }
 0x696   :  { %2435 = vmatprep.subr.bf16.mxu1 %v2651_v18 }
 0x697   :  { %v2432_v60 = vpack.c.bf16 %v2547_v56, %v2546_v57 }
 0x698   :  { %v2550_v50 = vpop.permute.xlu1 %2549 }
 0x699   :  { %v2552_v54 = vunpack.i.h.bf16 %v2550_v50  ;;  %v2551_v55 = vunpack.i.l.bf16 %v2550_v50 }
 0x69b   :  { %v2436_v59 = vpack.c.bf16 %v2552_v54, %v2551_v55 }
 0x69c   :  { %v1371_v61 = vpop.permute.xlu1 %1370 }
 0x69e   :  { %v2580_v41 = vpop.eup %2579 }
 0x69f   :  { %v1116_v42 = vsel %vm404_vm4, %v2580_v41, 0.0  ;;  %v2582_v43 = vpop.eup %2581 }
 0x6a0   :  { %1117 = vadd.xlane.f32.xlu0 %v1116_v42  ;;  %v1119_v38 = vsel %vm404_vm4, %v2582_v43, 0.0  ;;  %v1670_v42 = vld [vmem:[%s3058_s4 + $0x8] sm:$0xff] }
 0x6a4   :  { %1120 = vadd.xlane.f32.xlu0 %v1119_v38 }
 0x6ba   :  { %2534 = vrot.lane.b32.xlu0 %v2786_v30, %s2658_s20 }
 0x6be   :  { %1288 = vrot.lane.b32.xlu0 %v2799_v37, %s2659_s21 }
 0x72d   :  { %v1118_v44 = vpop.xlane.xlu0 %1117 }
 0x72e   :  { %2583 = vrcp.f32 %v1118_v44  ;;  %v1672_v44 = vld [vmem:[%s3058_s4 + $0x18] sm:$0xff] }
 0x731   :  { %v1121_v46 = vpop.xlane.xlu0 %1120 }
 0x732   :  { %2585 = vrcp.f32 %v1121_v46 }
 0x735   :  { %v2535_v47 = vpop.permute.xlu0 %2534 }
 0x736   :  { %v2537_v48 = vunpack.i.h.bf16 %v2535_v47  ;;  %v2536_v49 = vunpack.i.l.bf16 %v2535_v47 }
 0x738   :  { %v2584_v51 = vpop.eup %2583  ;;  %v2426_v52 = vpack.c.bf16 %v2537_v48, %v2536_v49 }
 0x739   :  { %v1123_v53 = vmul.f32 %v2584_v51, %v2580_v41  ;;  %v1289_v62 = vpop.permute.xlu0 %1288 }
 0x73a   :  { %2427 = vmatpush3.bf16.msra.mxu0 %v2426_v52 }
 0x73b   :  { %1127 = vst.msk [vmem:[#allocation4 + $0x10] sm:$0xff] %vm404_vm4, %v1123_v53  ;;  %2431 = vmatprep.subr.bf16.mxu0 %v2651_v18 }
 0x73c   :  { %v2586_v37 = vpop.eup %2585 }
 0x73d   :  { %v1125_v58 = vmul.f32 %v2586_v37, %v2582_v43  ;;  %2295 = vmatmul.mubr.msk.f32.vlgmr.msra.gmra.mrb[10].mxu0 %vm404_vm4, %v1123_v53  ;;  %v1671_v43 = vld [vmem:[%s3058_s4 + $0x10] sm:$0xff] }
 0x73e   :  { %2308 = vmatprep.mubr.msk.f32.mxu0 %vm2652_vm1, %v2653_v19  ;;  %v2449_v45 = vpack.c.bf16 %v1672_v44, %v1671_v43 }
 0x73f   :  { %1129 = vst.msk [vmem:[#allocation4 + $0x30] sm:$0xff] %vm404_vm4, %v1125_v58  ;;  %2302 = vmatmul.mubr.msk.f32.vlgmr.msra.gmra.mrb[16].mxu1 %vm404_vm4, %v1125_v58 }
 0x740   :  { %2438 = vmatpush3.bf16.xpose.msk.msra.mxu1 %vm2782_vm3, %v2436_v59  ;;  %2315 = vmatprep.mubr.msk.f32.mxu1 %vm2652_vm1, %v2653_v19 }
 0x741   :  { %2442 = vmatprep.subr.bf16.mxu1 %v2651_v18 }
 0x743   :  { %2434 = vmatpush3.bf16.xpose.msk.msra.mxu0 %vm2782_vm3, %v2432_v60 }
 0x744   :  { %2439 = vmatprep.subr.bf16.mxu0 %v2651_v18 }
 0x747   :  { %2316 = vmatmul.mubr.msk.f32.vlgmr.msra.gmra.mrb[18].mxu1 %vm243_vm2, %v1371_v61  ;;  %v2098_v61 = vld [vmem:[%s3061_s7 + $0x2] ss:$0 sm:$0xff] }
 0x748   :  { %2329 = vmatprep.mubr.msk.f32.mxu1 %vm2652_vm1, %v2653_v19 }
 0x74a   :  { %2309 = vmatmul.mubr.msk.f32.vlgmr.msra.gmra.mrb[12].mxu0 %vm243_vm2, %v1289_v62 }
 0x74b   :  { %2322 = vmatprep.mubr.msk.f32.mxu0 %vm2652_vm1, %v2653_v19 }
 0x810   :  { %v1205_v63 = vpop.f32.mrb[10].mxu0 }
 0x811   :  { %v2296_v0 = vpop.f32.mrb[11].mxu0 }
 0x812   :  { %v1284_v1 = vpop.f32.mrb[16].mxu1 }
 0x813   :  { %v2303_v2 = vpop.f32.mrb[17].mxu1 }
 0x81a   :  { %v1448_v27 = vpop.f32.mrb[18].mxu1 }
 0x81b   :  { %v1453_v3 = vmul.f32 0.35355338, %v1448_v27  ;;  %v2317_v4 = vpop.f32.mrb[19].mxu1 }
 0x81d   :  { %v1457_v18 = vsel %vm404_vm4, %v1453_v3, -inf  ;;  %v1366_v6 = vpop.f32.mrb[12].mxu0 }
 0x81e   :  { %1458 = vmax.xlane.f32.xlu1 %v1457_v18  ;;  %v1452_v7 = vmul.f32 0.35355338, %v1366_v6  ;;  %v2310_v8 = vpop.f32.mrb[13].mxu0 }
 0x820   :  { %v1454_v10 = vsel %vm404_vm4, %v1452_v7, -inf }
 0x821   :  { %1455 = vmax.xlane.f32.xlu0 %v1454_v10 }
 0x82f   :  { %2559 = vrot.lane.b32.xlu1 %v2794_v35, %s2660_s22 }
 0x833   :  { %1640 = vrot.lane.b32.xlu1 %v2883_v9, %s2661_s2 }
 0x837   :  { %1642 = vrot.lane.b32.xlu1 %v2885_v11, %s2661_s2 }
 0x83b   :  { %1650 = vrot.lane.b32.xlu1 %v1284_v1, %s2662_s23 }
 0x8ab   :  { %v1459_v19 = vpop.xlane.xlu1 %1458 }
 0x8ac   :  { %v1461_v13 = vsub.f32 %v1453_v3, %v1459_v19 }
 0x8ae   :  { %v1456_v14 = vpop.xlane.xlu0 %1455  ;;  %v1464_v22 = vmul.f32 1.442695, %v1461_v13 }
 0x8af   :  { %v2560_v15 = vpop.permute.xlu1 %2559  ;;  %v1460_v16 = vsub.f32 %v1452_v7, %v1456_v14  ;;  %v1800_v14 = vld [vmem:[%s3059_s5 + $0x8] sm:$0xff] }
 0x8b0   :  { %v2562_v17 = vunpack.i.h.bf16 %v2560_v15  ;;  %v2561_v20 = vunpack.i.l.bf16 %v2560_v15 }
 0x8b1   :  { %v1462_v24 = vmul.f32 1.442695, %v1460_v16  ;;  %v1801_v16 = vld [vmem:[%s3059_s5 + $0x10] sm:$0xff] }
 0x8b2   :  { %v2443_v25 = vpack.c.bf16 %v2562_v17, %v2561_v20  ;;  %v1802_v17 = vld [vmem:[%s3059_s5 + $0x18] sm:$0xff] }
 0x8b3   :  { %2587 = vpow2.f32 %v1462_v24  ;;  %v1641_v50 = vpop.permute.xlu1 %1640  ;;  %v2457_v20 = vpack.c.bf16 %v1802_v17, %v1801_v16  ;;  %v1891_v24 = vld [vmem:[%s3060_s6 + $0x8] sm:$0xff] }
 0x8b4   :  { %2444 = vmatpush3.bf16.msra.mxu1 %v2443_v25  ;;  %2589 = vpow2.f32 %v1464_v22  ;;  %v1662_v54 = vsel %vm243_vm2, %v2847_v21, %v1641_v50  ;;  %v1890_v22 = vld [vmem:[%s3060_s6] sm:$0xff]  ;;  %v1892_v25 = vld [vmem:[%s3060_s6 + $0x10] sm:$0xff] }
 0x8b7   :  { %v1643_v51 = vpop.permute.xlu1 %1642 }
 0x8b8   :  { %v1663_v56 = vsel %vm243_vm2, %v2849_v23, %v1643_v51  ;;  %v2103_v51 = vld [vmem:[%s3061_s7 + $0x3] ss:$0 sm:$0xff] }
 0x8bb   :  { %v1651_v53 = vpop.permute.xlu1 %1650 }
 0x8bc   :  { %v1665_v58 = vsel %vm404_vm4, %v1663_v56, %v1651_v53 }
 0x8bd   :  { %v2588_v35 = vpop.eup %2587 }
 0x8be   :  { %v1466_v9 = vsel %vm404_vm4, %v2588_v35, 0.0  ;;  %v2590_v26 = vpop.eup %2589 }
 0x8bf   :  { %1467 = vadd.xlane.f32.xlu0 %v1466_v9  ;;  %v1469_v11 = vsel %vm404_vm4, %v2590_v26, 0.0  ;;  %v1893_v9 = vld [vmem:[%s3060_s6 + $0x18] sm:$0xff] }
 0x8c3   :  { %1470 = vadd.xlane.f32.xlu0 %v1469_v11  ;;  %v1894_v11 = vld [vmem:[%s3060_s6 + $0x20] sm:$0xff] }
 0x8d9   :  { %2554 = vrot.lane.b32.xlu0 %v2786_v30, %s2660_s22  ;;  %v1669_v30 = vld [vmem:[%s3058_s4] sm:$0xff] }
 0x8da   :  { %v2445_v38 = vpack.c.bf16 %v1670_v42, %v1669_v30  ;;  %v2102_v42 = vld [vmem:[%s3061_s7 + $0x6] ss:$0 sm:$0xff] }
 0x8dd   :  { %1648 = vrot.lane.b32.xlu0 %v1205_v63, %s2662_s23 }
 0x94c   :  { %v1468_v28 = vpop.xlane.xlu0 %1467 }
 0x94d   :  { %2591 = vrcp.f32 %v1468_v28  ;;  %v1895_v28 = vld [vmem:[%s3060_s6 + $0x28] sm:$0xff] }
 0x950   :  { %v1471_v29 = vpop.xlane.xlu0 %1470 }
 0x951   :  { %2593 = vrcp.f32 %v1471_v29  ;;  %v2469_v29 = vpack.c.bf16 %v1895_v28, %v1894_v11 }
 0x954   :  { %v2555_v31 = vpop.permute.xlu0 %2554 }
 0x955   :  { %v2557_v32 = vunpack.i.h.bf16 %v2555_v31  ;;  %v2556_v33 = vunpack.i.l.bf16 %v2555_v31 }
 0x957   :  { %v2592_v34 = vpop.eup %2591  ;;  %v2440_v36 = vpack.c.bf16 %v2557_v32, %v2556_v33 }
 0x958   :  { %v1473_v39 = vmul.f32 %v2592_v34, %v2588_v35  ;;  %v1649_v52 = vpop.permute.xlu0 %1648  ;;  %v2461_v35 = vpack.c.bf16 %v1891_v24, %v1890_v22 }
 0x959   :  { %2441 = vmatpush3.bf16.msra.mxu0 %v2440_v36  ;;  %v1664_v55 = vsel %vm404_vm4, %v1662_v54, %v1649_v52 }
 0x95a   :  { %1477 = vst.msk [vmem:[#allocation4 + $0x18] sm:$0xff] %vm404_vm4, %v1473_v39  ;;  %2446 = vmatprep.subr.bf16.mxu0 %v2445_v38 }
 0x95b   :  { %v2594_v40 = vpop.eup %2593 }
 0x95c   :  { %v1475_v41 = vmul.f32 %v2594_v40, %v2590_v26  ;;  %2323 = vmatmul.mubr.msk.f32.vlgmr.msra.gmra.mrb[14].mxu0 %vm404_vm4, %v1473_v39  ;;  %v2465_v26 = vpack.c.bf16 %v1893_v9, %v1892_v25 }
 0x95d   :  { %2448 = vmatpush3.bf16.msra.mxu0 %v2445_v38 }
 0x95e   :  { %1479 = vst.msk [vmem:[#allocation4 + $0x38] sm:$0xff] %vm404_vm4, %v1475_v41  ;;  %2330 = vmatmul.mubr.msk.f32.vlgmr.msra.gmra.mrb[20].mxu1 %vm404_vm4, %v1475_v41  ;;  %2450 = vmatprep.subr.bf16.mxu0 %v2449_v45  ;;  %v2101_v41 = vld [vmem:[%s3061_s7 + $0x5] ss:$0 sm:$0xff] }
 0x961   :  { %2452 = vmatpush3.bf16.msra.mxu0 %v2449_v45 }
 0x962   :  { %2462 = vmatprep.subr.bf16.mxu0 %v2461_v35 }
 0xa2f   :  { %v1555_v46 = vpop.f32.mrb[14].mxu0 }
 0xa30   :  { %1656 = vrot.lane.b32.xlu0 %v1555_v46, %s2663_s0  ;;  %v2324_v47 = vpop.f32.mrb[15].mxu0 }
 0xa31   :  { %v1634_v48 = vpop.f32.mrb[20].mxu1 }
 0xa32   :  { %1658 = vrot.lane.b32.xlu1 %v1634_v48, %s2663_s0  ;;  %v2331_v49 = vpop.f32.mrb[21].mxu1  ;;  %v1896_v48 = vld [vmem:[%s3060_s6 + $0x30] sm:$0xff] }
 0xa33   :  { %v1897_v49 = vld [vmem:[%s3060_s6 + $0x38] sm:$0xff]  ;;  %s2664_s6 = smov [#allocation4]  }
 0xa34   :  { %v2473_v50 = vpack.c.bf16 %v1897_v49, %v1896_v48  ;;  %s2043_s16 = sshll.u32 %s2664_s6, 4  ;;  %s2044_s16 = int_to_ptr.vmem [resolvable:$true] %s2043_s16 }
 0xa35   :  { %s2603_s17 = scalar_lea.vmem %s2044_s16, 1024  ;;  %p2608_p1 = scmp.lt.s32.totalorder %s2044_s16, %s2044_s16 }
 0xa36   :  { %p2604_p0 = scmp.ne.s32.totalorder %s2044_s16, %s2603_s17  ;;  %p2609_p2 = scmp.lt.s32.totalorder %s2603_s17, %s2603_s17 }
 0xa38   :  { %p2610_p3 = por %p2609_p2, %p2608_p1 }
 0xa3a   :  { %p2611_p4 = pnand %p2610_p3, %p2604_p0 }
 0xaa2   :  { %v1657_v37 = vpop.permute.xlu0 %1656 }
 0xaa3   :  { %v1667_v57 = vsel %vm1666_vm5, %v1664_v55, %v1657_v37 }
 0xaa4   :  { %v1659_v59 = vpop.permute.xlu1 %1658  ;;  %2340 = vmatprep.mubr.msk.f32.mxu0 %vm56_vm0, %v1667_v57  ;;  %v2106_v57 = vld [vmem:[%s3061_s7 + $0x4] ss:$0 sm:$0xff] }
 0xaa5   :  { %v1668_v60 = vsel %vm1666_vm5, %v1665_v58, %v1659_v59 }
 0xaa6   :  { %2341 = vmatmul.mubr.msk.f32.vlgmr.msra.gmra.mrb[16].mxu0 %vm56_vm0, %v1668_v60 }
 0xaa7   :  { %2464 = vmatpush3.bf16.msra.mxu0 %v2461_v35 }
 0xaa8   :  { %2466 = vmatprep.subr.bf16.mxu0 %v2465_v26 }
 0xaab   :  { %2468 = vmatpush3.bf16.msra.mxu0 %v2465_v26 }
 0xaac   :  { %2470 = vmatprep.subr.bf16.mxu0 %v2469_v29 }
 0xaaf   :  { %2472 = vmatpush3.bf16.msra.mxu0 %v2469_v29 }
 0xab0   :  { %2474 = vmatprep.subr.bf16.mxu0 %v2473_v50 }
 0xab3   :  { %2476 = vmatpush3.bf16.msra.mxu0 %v2473_v50 }
 0xb79   :  { %v2342_v21 = vpop.f32.mrb[16].mxu0 }
 0xb7a   :  { %v1755_v62 = vadd.f32 %v2342_v21, %v2098_v61  ;;  %v1749_v63 = vpop.f32.mrb[17].mxu0 }
 0xb7b   :  { %v1750_v0 = vadd.f32 %v2098_v61, %v1749_v63 }
 0xb7c   :  { %v1759_v1 = vadd.f32 %v1755_v62, %v2751_v12 }
 0xb7d   :  { %v1758_v23 = vadd.f32 %v1750_v0, %v2732_v5  ;;  %v1799_v5 = vld [vmem:[%s3059_s5] sm:$0xff] }
 0xb7e   :  { %v1763_v2 = vsel %vm56_vm0, %v1759_v1, 0.0  ;;  %v2453_v15 = vpack.c.bf16 %v1800_v14, %v1799_v5 }
 0xb7f   :  { %1764 = vadd.xlane.f32.xlu1 %v1763_v2  ;;  %v1760_v27 = vsel %vm56_vm0, %v1758_v23, 0.0 }
 0xb80   :  { %1761 = vadd.xlane.f32.xlu0 %v1760_v27  ;;  %2454 = vmatprep.subr.bf16.mxu1 %v2453_v15 }
 0xb81   :  { %2456 = vmatpush3.bf16.msra.mxu1 %v2453_v15 }
 0xb82   :  { %2458 = vmatprep.subr.bf16.mxu1 %v2457_v20 }
 0xb85   :  { %2460 = vmatpush3.bf16.msra.mxu1 %v2457_v20 }
 0xc0c   :  { %v1765_v3 = vpop.xlane.xlu1 %1764 }
 0xc0d   :  { %v1768_v4 = vmul.f32 0.03125, %v1765_v3  ;;  %v1762_v18 = vpop.xlane.xlu0 %1761 }
 0xc0e   :  { %v1767_v6 = vmul.f32 0.03125, %v1762_v18 }
 0xc0f   :  { %v1770_v7 = vsub.f32 %v1759_v1, %v1768_v4 }
 0xc10   :  { %v1769_v8 = vsub.f32 %v1758_v23, %v1767_v6 }
 0xc11   :  { %v1772_v13 = vmul.f32 %v1770_v7, %v1770_v7 }
 0xc12   :  { %v1771_v10 = vmul.f32 %v1769_v8, %v1769_v8 }
 0xc13   :  { %v1776_v12 = vsel %vm56_vm0, %v1772_v13, 0.0 }
 0xc14   :  { %v1773_v19 = vsel %vm56_vm0, %v1771_v10, 0.0 }
 0xc15   :  { %1774 = vadd.xlane.f32.xlu0 %v1773_v19 }
 0xc19   :  { %1777 = vadd.xlane.f32.xlu0 %v1776_v12 }
 0xca2   :  { %v1775_v31 = vpop.xlane.xlu0 %1774 }
 0xca3   :  { %v1779_v32 = vmul.f32 0.03125, %v1775_v31 }
 0xca5   :  { %v1781_v33 = vadd.f32 1e-05, %v1779_v32 }
 0xca6   :  { %v1778_v34 = vpop.xlane.xlu0 %1777 }
 0xca7   :  { %2595 = vrsqrt.f32 %v1781_v33  ;;  %v1780_v36 = vmul.f32 0.03125, %v1778_v34 }
 0xca9   :  { %v1782_v39 = vadd.f32 1e-05, %v1780_v36 }
 0xcab   :  { %2597 = vrsqrt.f32 %v1782_v39 }
 0xcb1   :  { %v2596_v40 = vpop.eup %2595 }
 0xcb2   :  { %v1785_v30 = vmul.f32 %v2596_v40, %v1769_v8 }
 0xcb4   :  { %v1791_v43 = vmul.f32 %v2101_v41, %v1785_v30 }
 0xcb5   :  { %v2598_v38 = vpop.eup %2597 }
 0xcb6   :  { %v1786_v44 = vmul.f32 %v2598_v38, %v1770_v7  ;;  %v1797_v45 = vadd.f32 %v2102_v42, %v1791_v43 }
 0xcb8   :  { %v1792_v46 = vmul.f32 %v2101_v41, %v1786_v44  ;;  %2351 = vmatprep.mubr.msk.f32.mxu1 %vm56_vm0, %v1797_v45 }
 0xcba   :  { %v1798_v47 = vadd.f32 %v2102_v42, %v1792_v46 }
 0xcbc   :  { %2352 = vmatmul.mubr.msk.f32.vlgmr.msra.gmra.mrb[22].mxu1 %vm56_vm0, %v1798_v47 }
 0xd8f   :  { %v2353_v52 = vpop.f32.mrb[22].mxu1 }
 0xd90   :  { %v1885_v53 = vadd.f32 %v2353_v52, %v2103_v51  ;;  %v1879_v54 = vpop.f32.mrb[23].mxu1 }
 0xd91   :  { %v1880_v55 = vadd.f32 %v2103_v51, %v1879_v54 }
 0xd92   :  { %v1889_v56 = vmax.f32 %v1885_v53, 0.0 }
 0xd93   :  { %v1888_v37 = vmax.f32 %v1880_v55, 0.0 }
 0xd95   :  { %2370 = vmatprep.mubr.msk.f32.mxu0 %vm1902_vm6, %v1888_v37 }
 0xd96   :  { %2371 = vmatmul.mubr.msk.f32.vlgmr.msra.gmra.mrb[18].mxu0 %vm1902_vm6, %v1889_v56 }
 0xe69   :  { %v2372_v58 = vpop.f32.mrb[18].mxu0 }
 0xe6a   :  { %v1981_v59 = vadd.f32 %v2372_v58, %v2106_v57  ;;  %v1975_v60 = vpop.f32.mrb[19].mxu0 }
 0xe6b   :  { %v1976_v61 = vadd.f32 %v2106_v57, %v1975_v60 }
 0xe6c   :  { %v1985_v21 = vadd.f32 %v1981_v59, %v1798_v47 }
 0xe6d   :  { %v1984_v62 = vadd.f32 %v1976_v61, %v1797_v45 }
 0xe6e   :  { %v1989_v63 = vsel %vm56_vm0, %v1985_v21, 0.0 }
 0xe6f   :  { %1990 = vadd.xlane.f32.xlu1 %v1989_v63  ;;  %v1986_v0 = vsel %vm56_vm0, %v1984_v62, 0.0 }
 0xe70   :  { %1987 = vadd.xlane.f32.xlu0 %v1986_v0 }
 0xefc   :  { %v1991_v1 = vpop.xlane.xlu1 %1990 }
 0xefd   :  { %v1993_v23 = vmul.f32 0.03125, %v1991_v1  ;;  %v1988_v2 = vpop.xlane.xlu0 %1987 }
 0xefe   :  { %v1992_v27 = vmul.f32 0.03125, %v1988_v2 }
 0xeff   :  { %v1995_v3 = vsub.f32 %v1985_v21, %v1993_v23 }
 0xf00   :  { %v1994_v4 = vsub.f32 %v1984_v62, %v1992_v27 }
 0xf01   :  { %v1997_v18 = vmul.f32 %v1995_v3, %v1995_v3 }
 0xf02   :  { %v1996_v6 = vmul.f32 %v1994_v4, %v1994_v4 }
 0xf03   :  { %v2001_v7 = vsel %vm56_vm0, %v1997_v18, 0.0 }
 0xf04   :  { %2002 = vadd.xlane.f32.xlu1 %v2001_v7  ;;  %v1998_v8 = vsel %vm56_vm0, %v1996_v6, 0.0 }
 0xf05   :  { %1999 = vadd.xlane.f32.xlu0 %v1998_v8 }
 0xf06   :  { %2614 = shalt.err (!%p2611_p4)
}
 0xf07   :  { %s2615_s20 = scalar_lea.hbm %s3063_s9, 1024 }
 0xf08   :  { %p2616_p5 = scmp.ne.s32.totalorder %s3063_s9, %s2615_s20  ;;  %p2619_p6 = scmp.lt.u32.totalorder %s2615_s20, %s3063_s9 }
 0xf0a   :  { %p2621_p7 = pnand %p2619_p6, %p2616_p5 }
 0xf0c   :  { %2624 = shalt.err (!%p2621_p7)
}
 0xf0d   :  { %s2665_s25 = smov 128   ;;  %v2109_v16 = vld [vmem:[%s3061_s7 + $0x7] ss:$0 sm:$0xff]  ;;  %v2110_v22 = vld [vmem:[%s3061_s7 + $0x8] ss:$0 sm:$0xff] }
 0xf0e   :  { %2049 = dma.vmem_to_hbm [thread:$0]  %s2044_s16, 1024, %s3063_s9, [#allocation5], %s2665_s25, %s2665_s25, %s2661_s2  }
 0xf0f   :  { %s2666_s9 = smov [#allocation2]  }
 0xf10   :  { %s2031_s30 = sshll.u32 %s2666_s9, 4  ;;  %s2032_s30 = int_to_ptr.vmem [resolvable:$true] %s2031_s30 }
 0xf11   :  { %s2625_s0 = scalar_lea.vmem %s2032_s30, 256  ;;  %p2630_p9 = scmp.lt.s32.totalorder %s2032_s30, %s2032_s30 }
 0xf12   :  { %p2626_p8 = scmp.ne.s32.totalorder %s2032_s30, %s2625_s0  ;;  %p2631_p10 = scmp.lt.s32.totalorder %s2625_s0, %s2625_s0 }
 0xf14   :  { %p2632_p11 = por %p2631_p10, %p2630_p9 }
 0xf16   :  { %p2633_p12 = pnand %p2632_p11, %p2626_p8 }
 0xf91   :  { %v2003_v10 = vpop.xlane.xlu1 %2002 }
 0xf92   :  { %v2005_v19 = vmul.f32 0.03125, %v2003_v10  ;;  %v2000_v13 = vpop.xlane.xlu0 %1999 }
 0xf93   :  { %v2004_v12 = vmul.f32 0.03125, %v2000_v13 }
 0xf94   :  { %v2007_v5 = vadd.f32 1e-05, %v2005_v19 }
 0xf95   :  { %v2006_v14 = vadd.f32 1e-05, %v2004_v12 }
 0xf96   :  { %2599 = vrsqrt.f32 %v2007_v5 }
 0xf97   :  { %2601 = vrsqrt.f32 %v2006_v14 }
 0xfa0   :  { %v2600_v15 = vpop.eup %2599 }
 0xfa1   :  { %v2602_v17 = vpop.eup %2601  ;;  %v2011_v20 = vmul.f32 %v2600_v15, %v1995_v3 }
 0xfa2   :  { %v2010_v24 = vmul.f32 %v2602_v17, %v1994_v4 }
 0xfa3   :  { %v2017_v25 = vmul.f32 %v2109_v16, %v2011_v20 }
 0xfa4   :  { %v2016_v35 = vmul.f32 %v2109_v16, %v2010_v24 }
 0xfa5   :  { %v2023_v9 = vadd.f32 %v2110_v22, %v2017_v25 }
 0xfa6   :  { %v2022_v26 = vadd.f32 %v2110_v22, %v2016_v35 }
 0xfa7   :  { %2025 = vst.msk [vmem:[#allocation2 + $0x8] sm:$0xff] %vm56_vm0, %v2023_v9 }
 0xfa8   :  { %2024 = vst.msk [vmem:[#allocation2] sm:$0xff] %vm56_vm0, %v2022_v26 }
 0xfa9   :  { %2636 = shalt.err (!%p2633_p12)
}
 0xfaa   :  { %s2637_s10 = scalar_lea.hbm %s3062_s8, 256 }
 0xfab   :  { %p2638_p13 = scmp.ne.s32.totalorder %s3062_s8, %s2637_s10  ;;  %p2641_p0 = scmp.lt.u32.totalorder %s2637_s10, %s3062_s8 }
 0xfad   :  { %p2643_p1 = pnand %p2641_p0, %p2638_p13 }
 0xfaf   :  { %2646 = shalt.err (!%p2643_p1)
}
 0xfb0   :  { %2037 = dma.vmem_to_hbm [thread:$0]  %s2032_s30, 256, %s3062_s8, [#allocation3], %s2665_s25, %s2665_s25, %s2661_s2  }
 0xfb1   :  { %2647 = dma.done.wait [#allocation3], 256  }
 0xfb2   :  { %2648 = vsyncadd [#allocation3], 4294967040 }
 0xfb3   :  { %2649 = dma.done.wait [#allocation5], 1024  }
 0xfb4   :  { %2650 = vsyncadd [#allocation5], 4294966272 }
 0xfb5   :  { %2056 = vsyncpa [#allocation3], 1 }
 0xfb6   :  { %2057 = vsyncpa [#allocation5], 1 }

</bundles_post_ra>
